<compile_context>
chip_gen: v5e
topology: v5e:2x2
jax: 0.10.0
libtpu: 0.0.40
codegen_flags: <defaults>
</compile_context>

<pallas_src>
import jax
import jax.numpy as jnp
from jax.experimental import pallas as pl
from jax.experimental.pallas import tpu as pltpu

NUM_VIEWS = 4
PATCH = 32
IN_FEAT = PATCH * PATCH            # 1024
FUSED_FEAT = NUM_VIEWS * IN_FEAT   # 4096
HIDDEN = 512
OUT = 128


def _fusion_kernel(w_ref, x_ref, w1_ref, b1_ref, w2_ref, b2_ref, o_ref):
    # w_ref : SMEM (V,)   f32   softmax(attn) weights
    # x_ref : VMEM (TB, V*1024) f32   views packed along the lane axis
    # w1_ref: VMEM (1024, 512)  bf16
    # b1_ref: VMEM (1, 512)     f32
    # w2_ref: VMEM (512, 128)   bf16
    # b2_ref: VMEM (1, 128)     f32
    # o_ref : VMEM (TB, 128)    f32

    # Weighted view fusion in f32 (static, lane-aligned 1024-wide slices).
    acc = w_ref[0] * x_ref[:, 0:IN_FEAT]
    for v in range(1, NUM_VIEWS):
        acc = acc + w_ref[v] * x_ref[:, v * IN_FEAT:(v + 1) * IN_FEAT]

    # fc1 + ReLU: bf16 MXU inputs, f32 accumulation.
    h = jnp.dot(acc.astype(jnp.bfloat16), w1_ref[...],
                preferred_element_type=jnp.float32)
    h = jnp.maximum(h + b1_ref[...], 0.0)

    # fc2
    y = jnp.dot(h.astype(jnp.bfloat16), w2_ref[...],
                preferred_element_type=jnp.float32)
    o_ref[...] = (y + b2_ref[...]).astype(o_ref.dtype)


def _round_up(n, m):
    return ((n + m - 1) // m) * m


def fusion_model_forward(x, attn, w1, b1, w2, b2):
    """x: (B, V, P, P) float32; weights stored transposed vs. PyTorch:
    w1: (P*P, 512), b1: (512,), w2: (512, 128), b2: (128,)."""
    B, V, P, _ = x.shape
    assert V == NUM_VIEWS and P == PATCH

    # Wrapper glue: softmax of the 4-element attention vector; repack views onto
    # the lane axis so the kernel sees (B, V*P*P) with 1024-aligned view slices.
    w = jax.nn.softmax(attn.astype(jnp.float32), axis=0)              # (V,)
    x_flat = x.reshape(B, FUSED_FEAT).astype(jnp.float32)             # (B, 4096)

    # Batch tiling: multiple of 8 rows (unmasked output stores), capped at 256
    # (v7x 64 MiB VMEM; matches 256-row MXU M-dim on v6e/v7x).
    if B >= 256:
        tb = 256
    else:
        tb = max(8, _round_up(B, 8))
    b_pad = _round_up(B, tb)
    if b_pad != B:
        x_flat = jnp.pad(x_flat, ((0, b_pad - B), (0, 0)))
    grid = (b_pad // tb,)

    w1_bf = w1.astype(jnp.bfloat16)
    w2_bf = w2.astype(jnp.bfloat16)
    b1_2d = b1.astype(jnp.float32).reshape(1, HIDDEN)
    b2_2d = b2.astype(jnp.float32).reshape(1, OUT)

    flops = 2 * b_pad * IN_FEAT * HIDDEN + 2 * b_pad * HIDDEN * OUT \
        + 2 * b_pad * FUSED_FEAT
    bytes_accessed = (x_flat.size * 4 + w1_bf.size * 2 + w2_bf.size * 2
                      + b1_2d.size * 4 + b2_2d.size * 4 + b_pad * OUT * 4)

    out_padded = pl.pallas_call(
        _fusion_kernel,
        out_shape=jax.ShapeDtypeStruct((b_pad, OUT), jnp.float32),
        grid=grid,
        in_specs=[
            pl.BlockSpec(memory_space=pltpu.MemorySpace.SMEM),           # w (V,)
            pl.BlockSpec((tb, FUSED_FEAT), lambda i: (i, 0)),            # x tile
            pl.BlockSpec((IN_FEAT, HIDDEN), lambda i: (0, 0)),           # W1 (resident)
            pl.BlockSpec((1, HIDDEN), lambda i: (0, 0)),                 # b1 (resident)
            pl.BlockSpec((HIDDEN, OUT), lambda i: (0, 0)),               # W2 (resident)
            pl.BlockSpec((1, OUT), lambda i: (0, 0)),                    # b2 (resident)
        ],
        out_specs=pl.BlockSpec((tb, OUT), lambda i: (i, 0)),
        compiler_params=pltpu.CompilerParams(
            dimension_semantics=("parallel",),
            vmem_limit_bytes=32 * 1024 * 1024,
        ),
        cost_estimate=pl.CostEstimate(
            flops=flops, transcendentals=0, bytes_accessed=bytes_accessed),
    )(w, x_flat, w1_bf, b1_2d, w2_bf, b2_2d)

    return out_padded[:B]


def _reference(x, attn, w1, b1, w2, b2):
    w = jax.nn.softmax(attn, axis=0)
    xf = jnp.sum(w[None, :, None, None] * x, axis=1).reshape(x.shape[0], -1)
    h = jnp.maximum(xf @ w1 + b1, 0.0)
    return h @ w2 + b2


if __name__ == "__main__":
    key = jax.random.PRNGKey(0)
    k_x, k_w1, k_b1, k_w2, k_b2 = jax.random.split(key, 5)

    B = 2
    x = jax.random.normal(k_x, (B, NUM_VIEWS, PATCH, PATCH), dtype=jnp.float32)

    # Deterministic parameter init (shapes follow the module's __init__).
    attn = jnp.ones((NUM_VIEWS,), dtype=jnp.float32)                     # torch.ones(num_views)
    w1 = jax.random.normal(k_w1, (IN_FEAT, HIDDEN), jnp.float32) * 0.02
    b1 = jax.random.normal(k_b1, (HIDDEN,), jnp.float32) * 0.02
    w2 = jax.random.normal(k_w2, (HIDDEN, OUT), jnp.float32) * 0.02
    b2 = jax.random.normal(k_b2, (OUT,), jnp.float32) * 0.02

    out = fusion_model_forward(x, attn, w1, b1, w2, b2)
    out = jax.block_until_ready(out)

    ref = _reference(x, attn, w1, b1, w2, b2)
    assert out.shape == (B, OUT)
    # Tolerance loosened vs. pure-f32: MXU inputs are intentionally bf16
    # (f32 accumulation kept) per the performance review.
    assert jnp.allclose(out, ref, atol=2e-2, rtol=2e-2), "mismatch vs reference"

    print("KERNEL_OK")
</pallas_src>

<mosaic_0001>
module attributes {stable_mosaic.version = 11 : i64} {
  func.func @_fusion_kernel(%arg0: i32, %arg1: memref<4xf32, #tpu.memory_space<smem>>, %arg2: memref<8x4096xf32, #tpu.memory_space<vmem>>, %arg3: memref<1024x512xbf16, #tpu.memory_space<vmem>>, %arg4: memref<1x512xf32, #tpu.memory_space<vmem>>, %arg5: memref<512x128xbf16, #tpu.memory_space<vmem>>, %arg6: memref<1x128xf32, #tpu.memory_space<vmem>>, %arg7: memref<8x128xf32, #tpu.memory_space<vmem>>) attributes {dimension_semantics = [#tpu.dimension_semantics<parallel>], iteration_bounds = array<i64: 1>, scalar_prefetch = 0 : i64, scratch_operands = 0 : i64, tpu.core_type = #tpu.core_type<tc>, window_params = [{transform_indices = @transform_0, window_bounds = array<i64: 4>}, {transform_indices = @transform_1, window_bounds = array<i64: 8, 4096>}, {pipeline_mode = #tpu.pipeline_mode<synchronous>, transform_indices = @transform_2, window_bounds = array<i64: 1024, 512>}, {pipeline_mode = #tpu.pipeline_mode<synchronous>, transform_indices = @transform_3, window_bounds = array<i64: 1, 512>}, {pipeline_mode = #tpu.pipeline_mode<synchronous>, transform_indices = @transform_4, window_bounds = array<i64: 512, 128>}, {pipeline_mode = #tpu.pipeline_mode<synchronous>, transform_indices = @transform_5, window_bounds = array<i64: 1, 128>}, {transform_indices = @transform_6, window_bounds = array<i64: 8, 128>}]} {
    %c0 = arith.constant 0 : index
    %0 = memref.load %arg1[%c0] : memref<4xf32, #tpu.memory_space<smem>>
    %c0_0 = arith.constant 0 : index
    %c0_1 = arith.constant 0 : index
    %1 = vector.load %arg2[%c0_0, %c0_1] : memref<8x4096xf32, #tpu.memory_space<vmem>>, vector<8x1024xf32>
    %2 = vector.broadcast %0 : f32 to vector<8x1024xf32>
    %3 = arith.mulf %2, %1 : vector<8x1024xf32>
    %c1 = arith.constant 1 : index
    %4 = memref.load %arg1[%c1] : memref<4xf32, #tpu.memory_space<smem>>
    %c0_2 = arith.constant 0 : index
    %c1024 = arith.constant 1024 : index
    %5 = vector.load %arg2[%c0_2, %c1024] : memref<8x4096xf32, #tpu.memory_space<vmem>>, vector<8x1024xf32>
    %6 = vector.broadcast %4 : f32 to vector<8x1024xf32>
    %7 = arith.mulf %6, %5 : vector<8x1024xf32>
    %8 = arith.addf %3, %7 : vector<8x1024xf32>
    %c2 = arith.constant 2 : index
    %9 = memref.load %arg1[%c2] : memref<4xf32, #tpu.memory_space<smem>>
    %c0_3 = arith.constant 0 : index
    %c2048 = arith.constant 2048 : index
    %10 = vector.load %arg2[%c0_3, %c2048] : memref<8x4096xf32, #tpu.memory_space<vmem>>, vector<8x1024xf32>
    %11 = vector.broadcast %9 : f32 to vector<8x1024xf32>
    %12 = arith.mulf %11, %10 : vector<8x1024xf32>
    %13 = arith.addf %8, %12 : vector<8x1024xf32>
    %c3 = arith.constant 3 : index
    %14 = memref.load %arg1[%c3] : memref<4xf32, #tpu.memory_space<smem>>
    %c0_4 = arith.constant 0 : index
    %c3072 = arith.constant 3072 : index
    %15 = vector.load %arg2[%c0_4, %c3072] : memref<8x4096xf32, #tpu.memory_space<vmem>>, vector<8x1024xf32>
    %16 = vector.broadcast %14 : f32 to vector<8x1024xf32>
    %17 = arith.mulf %16, %15 : vector<8x1024xf32>
    %18 = arith.addf %13, %17 : vector<8x1024xf32>
    %19 = arith.truncf %18 : vector<8x1024xf32> to vector<8x1024xbf16>
    %c0_5 = arith.constant 0 : index
    %c0_6 = arith.constant 0 : index
    %20 = vector.load %arg3[%c0_5, %c0_6] : memref<1024x512xbf16, #tpu.memory_space<vmem>>, vector<1024x512xbf16>
    %cst = arith.constant dense<0.000000e+00> : vector<8x512xf32>
    %21 = tpu.matmul %19, %20, %cst {dimension_numbers = #tpu.dot_dimension_numbers<[1], [0], [0], [1], [0, 0, 1, 1], [], []>} : vector<8x1024xbf16>, vector<1024x512xbf16>, vector<8x512xf32> -> vector<8x512xf32>
    %c0_7 = arith.constant 0 : index
    %c0_8 = arith.constant 0 : index
    %22 = vector.load %arg4[%c0_7, %c0_8] : memref<1x512xf32, #tpu.memory_space<vmem>>, vector<1x512xf32>
    %23 = vector.broadcast %22 : vector<1x512xf32> to vector<8x512xf32>
    %24 = arith.addf %21, %23 : vector<8x512xf32>
    %cst_9 = arith.constant 0.000000e+00 : f32
    %25 = vector.broadcast %cst_9 : f32 to vector<8x512xf32>
    %26 = arith.maximumf %24, %25 : vector<8x512xf32>
    %27 = arith.truncf %26 : vector<8x512xf32> to vector<8x512xbf16>
    %c0_10 = arith.constant 0 : index
    %c0_11 = arith.constant 0 : index
    %28 = vector.load %arg5[%c0_10, %c0_11] : memref<512x128xbf16, #tpu.memory_space<vmem>>, vector<512x128xbf16>
    %cst_12 = arith.constant dense<0.000000e+00> : vector<8x128xf32>
    %29 = tpu.matmul %27, %28, %cst_12 {dimension_numbers = #tpu.dot_dimension_numbers<[1], [0], [0], [1], [0, 0, 1, 1], [], []>} : vector<8x512xbf16>, vector<512x128xbf16>, vector<8x128xf32> -> vector<8x128xf32>
    %c0_13 = arith.constant 0 : index
    %c0_14 = arith.constant 0 : index
    %30 = vector.load %arg6[%c0_13, %c0_14] : memref<1x128xf32, #tpu.memory_space<vmem>>, vector<1x128xf32>
    %31 = vector.broadcast %30 : vector<1x128xf32> to vector<8x128xf32>
    %32 = arith.addf %29, %31 : vector<8x128xf32>
    %c0_15 = arith.constant 0 : index
    %c0_16 = arith.constant 0 : index
    %33 = vector.load %arg7[%c0_15, %c0_16] : memref<8x128xf32, #tpu.memory_space<vmem>>, vector<8x128xf32>
    tpu.vector_store %arg7[%c0_15, %c0_16], %32 {strides = array<i32>} : memref<8x128xf32, #tpu.memory_space<vmem>>, vector<8x128xf32>,
    return
  }
  func.func @transform_0(%arg0: i32) -> i32 {
    %c0_i32 = arith.constant 0 : i32
    %c0_i32_0 = arith.constant 0 : i32
    return %c0_i32 : i32
  }
  func.func @transform_1(%arg0: i32) -> (i32, i32) {
    %c0_i32 = arith.constant 0 : i32
    %c0_i32_0 = arith.constant 0 : i32
    return %arg0, %c0_i32 : i32, i32
  }
  func.func @transform_2(%arg0: i32) -> (i32, i32) {
    %c0_i32 = arith.constant 0 : i32
    %c0_i32_0 = arith.constant 0 : i32
    %c0_i32_1 = arith.constant 0 : i32
    return %c0_i32, %c0_i32_0 : i32, i32
  }
  func.func @transform_3(%arg0: i32) -> (i32, i32) {
    %c0_i32 = arith.constant 0 : i32
    %c0_i32_0 = arith.constant 0 : i32
    %c0_i32_1 = arith.constant 0 : i32
    return %c0_i32, %c0_i32_0 : i32, i32
  }
  func.func @transform_4(%arg0: i32) -> (i32, i32) {
    %c0_i32 = arith.constant 0 : i32
    %c0_i32_0 = arith.constant 0 : i32
    %c0_i32_1 = arith.constant 0 : i32
    return %c0_i32, %c0_i32_0 : i32, i32
  }
  func.func @transform_5(%arg0: i32) -> (i32, i32) {
    %c0_i32 = arith.constant 0 : i32
    %c0_i32_0 = arith.constant 0 : i32
    %c0_i32_1 = arith.constant 0 : i32
    return %c0_i32, %c0_i32_0 : i32, i32
  }
  func.func @transform_6(%arg0: i32) -> (i32, i32) {
    %c0_i32 = arith.constant 0 : i32
    %c0_i32_0 = arith.constant 0 : i32
    return %arg0, %c0_i32 : i32, i32
  }
}

</mosaic_0001>

<bundles_post_ra>
// kernel: tpu_custom_call.1
= control target key start
LH: loop header
LB: loop body
LE: loop exit
PB: predicated region body
PF: predicated region fallthrough
CT: control target
= control target key end

     0   :  { %11 = vsyncpa [#allocation5], 0  ;;  %s4457_s0 = inlined_call_operand.hbm [shape: f32[4], index: 0, kind: input, shape index: {}]   ;;  %s4458_s1 = inlined_call_operand.hbm [shape: f32[8,4096], index: 1, kind: input, shape index: {}]   ;;  %s4459_s2 = inlined_call_operand.hbm [shape: bf16[1024,512], index: 2, kind: input, shape index: {}]   ;;  %s4460_s3 = inlined_call_operand.hbm [shape: f32[1,512], index: 3, kind: input, shape index: {}]   ;;  %s4461_s4 = inlined_call_operand.hbm [shape: bf16[512,128], index: 4, kind: input, shape index: {}]   ;;  %s4462_s5 = inlined_call_operand.vmem [shape: f32[1,128], index: 5, kind: input, shape index: {}]   ;;  %s4463_s6 = inlined_call_operand.hbm [shape: f32[8,128], index: 6, kind: output, shape index: {}]  }
   0x1   :  { %12 = vsyncpa [#allocation3], 0 }
   0x2   :  { %13 = vsyncpa [#allocation8], 0 }
   0x3   :  { %14 = vsyncpa [#allocation11], 0  ;;  %s40_s23 = sshll.u32 %s4459_s2, 4  ;;  %s41_s23 = int_to_ptr.hbm [resolvable:$true] %s40_s23 }
   0x4   :  { %15 = vsyncpa [#allocation4], 0  ;;  %s4099_s24 = smov [#allocation7]   ;;  %s21_s28 = sshll.u32 %s4457_s0, 4  ;;  %s22_s28 = int_to_ptr.hbm [resolvable:$true] %s21_s28 }
   0x5   :  { %s42_s25 = sshll.u32 %s4099_s24, 4  ;;  %s4100_s29 = smov 256   ;;  %s43_s25 = int_to_ptr.vmem [resolvable:$true] %s42_s25 }
   0x6   :  { %s4101_s30 = smov 16   ;;  %s4102_s7 = smov [#allocation2]  }
   0x7   :  { %48 = dma.hbm_to_vmem [thread:$0]  %s41_s23, 32768, %s43_s25, [#allocation8], %s4100_s29, %s4100_s29, %s4101_s30  }
   0x8   :  { %24 = dma.hbm_to_smem %s22_s28, 16, %s4102_s7, [#allocation5]  }
   0x9   :  { %s30_s10 = sshll.u32 %s4458_s1, 4  ;;  %s4103_s2 = smov [#allocation6]   ;;  %s31_s10 = int_to_ptr.hbm [resolvable:$true] %s30_s10 }
   0xa   :  { %s32_s11 = sshll.u32 %s4103_s2, 4  ;;  %s54_s14 = sshll.u32 %s4460_s3, 4  ;;  %s33_s11 = int_to_ptr.vmem [resolvable:$true] %s32_s11  ;;  %s55_s14 = int_to_ptr.hbm [resolvable:$true] %s54_s14 }
   0xb   :  { %35 = dma.hbm_to_vmem [thread:$0]  %s31_s10, 4096, %s33_s11, [#allocation3]  }
   0xc   :  { %s4104_s0 = smov [#allocation9]   ;;  %s64_s18 = sshll.u32 %s4461_s4, 4  ;;  %s65_s18 = int_to_ptr.hbm [resolvable:$true] %s64_s18 }
   0xd   :  { %s56_s15 = sshll.u32 %s4104_s0, 4  ;;  %s4105_s1 = smov [#allocation10]   ;;  %s57_s15 = int_to_ptr.vmem [resolvable:$true] %s56_s15 }
   0xe   :  { %59 = dma.hbm_to_vmem [thread:$0]  %s55_s14, 64, %s57_s15, [#allocation8]  }
   0xf   :  { %s66_s19 = sshll.u32 %s4105_s1, 4  ;;  %s4106_s20 = smov 64   ;;  %s67_s19 = int_to_ptr.vmem [resolvable:$true] %s66_s19 }
  0x10   :  { %s4107_s21 = smov 4  }
  0x11   :  { %72 = dma.hbm_to_vmem [thread:$0]  %s65_s18, 4096, %s67_s19, [#allocation11], %s4106_s20, %s4106_s20, %s4107_s21  }
  0x12   :  { %4089 = dma.done.wait [#allocation5], 16  }
  0x13   :  { %4090 = vsyncadd [#allocation5], 4294967280 }
  0x14   :  { %4091 = dma.done.wait [#allocation3], 4096  }
  0x15   :  { %4092 = vsyncadd [#allocation3], 4294963200 }
  0x16   :  { %4093 = dma.done.wait [#allocation8], 32832  }
  0x17   :  { %4094 = vsyncadd [#allocation8], 4294934464 }
  0x18   :  { %4095 = dma.done.wait [#allocation11], 4096  }
  0x19   :  { %4096 = vsyncadd [#allocation11], 4294963200 }
  0x1a   :  { %95 = sfence }
  0x1b   :  { %v2620_v0 = vld [vmem:[#allocation7 + $0xe0] sm:$0xf]  ;;  %v3688_v1 = vld [vmem:[#allocation7 + $0xec] sm:$0xf0]  ;;  %s4179_s3 = sld [smem:[#allocation2]]  ;;  %s4108_s26 = smov [#allocation12]  }
  0x1c   :  { %v2748_v2 = vld [vmem:[#allocation7 + $0x1e0] sm:$0xf]  ;;  %v2621_v3 = vor.u32 %v3688_v1, %v2620_v0  ;;  %v3720_v4 = vld [vmem:[#allocation7 + $0x1ec] sm:$0xf0]  ;;  %s4185_s4 = sld [smem:[#allocation2 + $0x1]]  ;;  %s2488_s27 = sshll.u32 %s4108_s26, 4  ;;  %s2489_s27 = int_to_ptr.vmem [resolvable:$true] %s2488_s27 }
  0x1d   :  { %v2876_v5 = vld [vmem:[#allocation7 + $0x2e0] sm:$0xf]  ;;  %v3752_v6 = vld [vmem:[#allocation7 + $0x2ec] sm:$0xf0]  ;;  %v2749_v7 = vor.u32 %v3720_v4, %v2748_v2  ;;  %s4191_s22 = sld [smem:[#allocation2 + $0x2]]  ;;  %s2490_s30 = sshll.u32 %s4463_s6, 4  ;;  %s2491_s30 = int_to_ptr.hbm [resolvable:$true] %s2490_s30 }
  0x1e   :  { %v2877_v8 = vor.u32 %v3752_v6, %v2876_v5  ;;  %v3004_v9 = vld [vmem:[#allocation7 + $0x3e0] sm:$0xf]  ;;  %v3784_v10 = vld [vmem:[#allocation7 + $0x3ec] sm:$0xf0]  ;;  %1746 = vmatpush.bf16.msra.mxu0 %v2621_v3  ;;  %s4197_s23 = sld [smem:[#allocation2 + $0x3]] }
  0x1f   :  { %v2604_v11 = vld [vmem:[#allocation7 + $0xc0] sm:$0xf]  ;;  %v3005_v12 = vor.u32 %v3784_v10, %v3004_v9  ;;  %v3684_v13 = vld [vmem:[#allocation7 + $0xcc] sm:$0xf0]  ;;  %1759 = vmatpush.bf16.msra.mxu1 %v2749_v7 }
  0x20   :  { %v2732_v14 = vld [vmem:[#allocation7 + $0x1c0] sm:$0xf]  ;;  %v3716_v15 = vld [vmem:[#allocation7 + $0x1cc] sm:$0xf0]  ;;  %1772 = vmatpush.bf16.msra.mxu2 %v2877_v8  ;;  %v2605_v16 = vor.u32 %v3684_v13, %v2604_v11 }
  0x21   :  { %v2733_v17 = vor.u32 %v3716_v15, %v2732_v14  ;;  %v2860_v18 = vld [vmem:[#allocation7 + $0x2c0] sm:$0xf]  ;;  %v3748_v19 = vld [vmem:[#allocation7 + $0x2cc] sm:$0xf0]  ;;  %1785 = vmatpush.bf16.msra.mxu3 %v3005_v12 }
  0x22   :  { %v2988_v20 = vld [vmem:[#allocation7 + $0x3c0] sm:$0xf]  ;;  %v2861_v21 = vor.u32 %v3748_v19, %v2860_v18  ;;  %v3780_v22 = vld [vmem:[#allocation7 + $0x3cc] sm:$0xf0]  ;;  %1747 = vmatpush.bf16.msra.mxu0 %v2605_v16 }
  0x23   :  { %v2588_v23 = vld [vmem:[#allocation7 + $0xa0] sm:$0xf]  ;;  %v3680_v24 = vld [vmem:[#allocation7 + $0xac] sm:$0xf0]  ;;  %v2989_v25 = vor.u32 %v3780_v22, %v2988_v20  ;;  %1760 = vmatpush.bf16.msra.mxu1 %v2733_v17 }
  0x24   :  { %v2716_v26 = vld [vmem:[#allocation7 + $0x1a0] sm:$0xf]  ;;  %v3712_v27 = vld [vmem:[#allocation7 + $0x1ac] sm:$0xf0]  ;;  %v2589_v29 = vor.u32 %v3680_v24, %v2588_v23  ;;  %1773 = vmatpush.bf16.msra.mxu2 %v2861_v21 }
  0x25   :  { %v2844_v28 = vld [vmem:[#allocation7 + $0x2a0] sm:$0xf]  ;;  %v3744_v30 = vld [vmem:[#allocation7 + $0x2ac] sm:$0xf0]  ;;  %v2717_v33 = vor.u32 %v3712_v27, %v2716_v26  ;;  %1786 = vmatpush.bf16.msra.mxu3 %v2989_v25 }
  0x26   :  { %v2972_v31 = vld [vmem:[#allocation7 + $0x3a0] sm:$0xf]  ;;  %v3776_v32 = vld [vmem:[#allocation7 + $0x3ac] sm:$0xf0]  ;;  %v2845_v34 = vor.u32 %v3744_v30, %v2844_v28  ;;  %1748 = vmatpush.bf16.msra.mxu0 %v2589_v29 }
  0x27   :  { %v2572_v35 = vld [vmem:[#allocation7 + $0x80] sm:$0xf]  ;;  %v3676_v36 = vld [vmem:[#allocation7 + $0x8c] sm:$0xf0]  ;;  %v2973_v38 = vor.u32 %v3776_v32, %v2972_v31  ;;  %1761 = vmatpush.bf16.msra.mxu1 %v2717_v33 }
  0x28   :  { %v2700_v37 = vld [vmem:[#allocation7 + $0x180] sm:$0xf]  ;;  %v3708_v39 = vld [vmem:[#allocation7 + $0x18c] sm:$0xf0]  ;;  %v2573_v44 = vor.u32 %v3676_v36, %v2572_v35  ;;  %1774 = vmatpush.bf16.msra.mxu2 %v2845_v34 }
  0x29   :  { %v2828_v40 = vld [vmem:[#allocation7 + $0x280] sm:$0xf]  ;;  %v3740_v41 = vld [vmem:[#allocation7 + $0x28c] sm:$0xf0]  ;;  %v2701_v45 = vor.u32 %v3708_v39, %v2700_v37  ;;  %1787 = vmatpush.bf16.msra.mxu3 %v2973_v38 }
  0x2a   :  { %v2956_v42 = vld [vmem:[#allocation7 + $0x380] sm:$0xf]  ;;  %v3772_v43 = vld [vmem:[#allocation7 + $0x38c] sm:$0xf0]  ;;  %v2829_v46 = vor.u32 %v3740_v41, %v2828_v40  ;;  %1749 = vmatpush.bf16.msra.mxu0 %v2573_v44 }
  0x2b   :  { %v2556_v47 = vld [vmem:[#allocation7 + $0x60] sm:$0xf]  ;;  %v3672_v48 = vld [vmem:[#allocation7 + $0x6c] sm:$0xf0]  ;;  %v2957_v50 = vor.u32 %v3772_v43, %v2956_v42  ;;  %1762 = vmatpush.bf16.msra.mxu1 %v2701_v45 }
  0x2c   :  { %v2684_v49 = vld [vmem:[#allocation7 + $0x160] sm:$0xf]  ;;  %v3704_v51 = vld [vmem:[#allocation7 + $0x16c] sm:$0xf0]  ;;  %v2557_v56 = vor.u32 %v3672_v48, %v2556_v47  ;;  %1775 = vmatpush.bf16.msra.mxu2 %v2829_v46 }
  0x2d   :  { %v2812_v52 = vld [vmem:[#allocation7 + $0x260] sm:$0xf]  ;;  %v3736_v53 = vld [vmem:[#allocation7 + $0x26c] sm:$0xf0]  ;;  %v2685_v57 = vor.u32 %v3704_v51, %v2684_v49  ;;  %1788 = vmatpush.bf16.msra.mxu3 %v2957_v50 }
  0x2e   :  { %v2940_v54 = vld [vmem:[#allocation7 + $0x360] sm:$0xf]  ;;  %v3768_v55 = vld [vmem:[#allocation7 + $0x36c] sm:$0xf0]  ;;  %v2813_v58 = vor.u32 %v3736_v53, %v2812_v52  ;;  %1750 = vmatpush.bf16.msra.mxu0 %v2557_v56 }
  0x2f   :  { %v2540_v59 = vld [vmem:[#allocation7 + $0x40] sm:$0xf]  ;;  %v3668_v60 = vld [vmem:[#allocation7 + $0x4c] sm:$0xf0]  ;;  %v2941_v62 = vor.u32 %v3768_v55, %v2940_v54  ;;  %1763 = vmatpush.bf16.msra.mxu1 %v2685_v57 }
  0x30   :  { %v2668_v61 = vld [vmem:[#allocation7 + $0x140] sm:$0xf]  ;;  %v3700_v63 = vld [vmem:[#allocation7 + $0x14c] sm:$0xf0]  ;;  %v2541_v4 = vor.u32 %v3668_v60, %v2540_v59  ;;  %1776 = vmatpush.bf16.msra.mxu2 %v2813_v58 }
  0x31   :  { %v2796_v0 = vld [vmem:[#allocation7 + $0x240] sm:$0xf]  ;;  %v3732_v1 = vld [vmem:[#allocation7 + $0x24c] sm:$0xf0]  ;;  %v2669_v5 = vor.u32 %v3700_v63, %v2668_v61  ;;  %1789 = vmatpush.bf16.msra.mxu3 %v2941_v62 }
  0x32   :  { %v2924_v2 = vld [vmem:[#allocation7 + $0x340] sm:$0xf]  ;;  %v3764_v3 = vld [vmem:[#allocation7 + $0x34c] sm:$0xf0]  ;;  %v2797_v6 = vor.u32 %v3732_v1, %v2796_v0  ;;  %1751 = vmatpush.bf16.msra.mxu0 %v2541_v4 }
  0x33   :  { %v2524_v7 = vld [vmem:[#allocation7 + $0x20] sm:$0xf]  ;;  %v3664_v8 = vld [vmem:[#allocation7 + $0x2c] sm:$0xf0]  ;;  %v2925_v10 = vor.u32 %v3764_v3, %v2924_v2  ;;  %1764 = vmatpush.bf16.msra.mxu1 %v2669_v5 }
  0x34   :  { %v2652_v9 = vld [vmem:[#allocation7 + $0x120] sm:$0xf]  ;;  %v3696_v11 = vld [vmem:[#allocation7 + $0x12c] sm:$0xf0]  ;;  %v2525_v16 = vor.u32 %v3664_v8, %v2524_v7  ;;  %1777 = vmatpush.bf16.msra.mxu2 %v2797_v6 }
  0x35   :  { %v2780_v12 = vld [vmem:[#allocation7 + $0x220] sm:$0xf]  ;;  %v3728_v13 = vld [vmem:[#allocation7 + $0x22c] sm:$0xf0]  ;;  %v2653_v19 = vor.u32 %v3696_v11, %v2652_v9  ;;  %1790 = vmatpush.bf16.msra.mxu3 %v2925_v10 }
  0x36   :  { %v2908_v14 = vld [vmem:[#allocation7 + $0x320] sm:$0xf]  ;;  %v3760_v15 = vld [vmem:[#allocation7 + $0x32c] sm:$0xf0]  ;;  %v2781_v20 = vor.u32 %v3728_v13, %v2780_v12  ;;  %1752 = vmatpush.bf16.msra.mxu0 %v2525_v16 }
  0x37   :  { %v2508_v17 = vld [vmem:[#allocation7] sm:$0xf]  ;;  %v3660_v18 = vld [vmem:[#allocation7 + $0xc] sm:$0xf0]  ;;  %v2909_v24 = vor.u32 %v3760_v15, %v2908_v14  ;;  %1765 = vmatpush.bf16.msra.mxu1 %v2653_v19 }
  0x38   :  { %v2636_v21 = vld [vmem:[#allocation7 + $0x100] sm:$0xf]  ;;  %v3692_v22 = vld [vmem:[#allocation7 + $0x10c] sm:$0xf0]  ;;  %v2509_v31 = vor.u32 %v3660_v18, %v2508_v17  ;;  %1778 = vmatpush.bf16.msra.mxu2 %v2781_v20 }
  0x39   :  { %v2764_v23 = vld [vmem:[#allocation7 + $0x200] sm:$0xf]  ;;  %v3724_v25 = vld [vmem:[#allocation7 + $0x20c] sm:$0xf0]  ;;  %v2637_v35 = vor.u32 %v3692_v22, %v2636_v21  ;;  %1791 = vmatpush.bf16.msra.mxu3 %v2909_v24 }
  0x3a   :  { %v2892_v26 = vld [vmem:[#allocation7 + $0x300] sm:$0xf]  ;;  %v3756_v27 = vld [vmem:[#allocation7 + $0x30c] sm:$0xf0]  ;;  %v2765_v36 = vor.u32 %v3724_v25, %v2764_v23  ;;  %1753 = vmatpush.bf16.msra.mxu0 %v2509_v31 }
  0x3b   :  { %v3132_v28 = vld [vmem:[#allocation7 + $0x4e0] sm:$0xf]  ;;  %v3816_v29 = vld [vmem:[#allocation7 + $0x4ec] sm:$0xf0]  ;;  %v2893_v39 = vor.u32 %v3756_v27, %v2892_v26  ;;  %1766 = vmatpush.bf16.msra.mxu1 %v2637_v35  ;;  %v100_v27 = vld [vmem:[#allocation6 + $0x18] sm:$0xff] }
  0x3c   :  { %v3260_v30 = vld [vmem:[#allocation7 + $0x5e0] sm:$0xf]  ;;  %v3848_v32 = vld [vmem:[#allocation7 + $0x5ec] sm:$0xf0]  ;;  %v3133_v40 = vor.u32 %v3816_v29, %v3132_v28  ;;  %1779 = vmatpush.bf16.msra.mxu2 %v2765_v36 }
  0x3d   :  { %v3388_v33 = vld [vmem:[#allocation7 + $0x6e0] sm:$0xf]  ;;  %v3880_v34 = vld [vmem:[#allocation7 + $0x6ec] sm:$0xf0]  ;;  %v3261_v41 = vor.u32 %v3848_v32, %v3260_v30  ;;  %1792 = vmatpush.bf16.msra.mxu3 %v2893_v39  ;;  %v4220_v39 = vstv %s4179_s3 }
  0x3e   :  { %v3516_v37 = vld [vmem:[#allocation7 + $0x7e0] sm:$0xf]  ;;  %v3912_v38 = vld [vmem:[#allocation7 + $0x7ec] sm:$0xf0]  ;;  %v3389_v42 = vor.u32 %v3880_v34, %v3388_v33  ;;  %1798 = vmatpush.bf16.msrb.mxu0 %v3133_v40  ;;  %v118_v33 = vld [vmem:[#allocation6 + $0x58] sm:$0xff] }
  0x3f   :  { %v3116_v43 = vld [vmem:[#allocation7 + $0x4c0] sm:$0xf]  ;;  %v3812_v44 = vld [vmem:[#allocation7 + $0x4cc] sm:$0xf0]  ;;  %v3517_v46 = vor.u32 %v3912_v38, %v3516_v37  ;;  %1811 = vmatpush.bf16.msrb.mxu1 %v3261_v41 }
  0x40   :  { %v3244_v45 = vld [vmem:[#allocation7 + $0x5c0] sm:$0xf]  ;;  %v3844_v47 = vld [vmem:[#allocation7 + $0x5cc] sm:$0xf0]  ;;  %v3117_v52 = vor.u32 %v3812_v44, %v3116_v43  ;;  %1824 = vmatpush.bf16.msrb.mxu2 %v3389_v42  ;;  %v144_v42 = vld [vmem:[#allocation6 + $0x98] sm:$0xff] }
  0x41   :  { %v3372_v48 = vld [vmem:[#allocation7 + $0x6c0] sm:$0xf]  ;;  %v3876_v49 = vld [vmem:[#allocation7 + $0x6cc] sm:$0xf0]  ;;  %v3245_v55 = vor.u32 %v3844_v47, %v3244_v45  ;;  %1837 = vmatpush.bf16.msrb.mxu3 %v3517_v46  ;;  %v4226_v45 = vstv %s4185_s4 }
  0x42   :  { %v3500_v50 = vld [vmem:[#allocation7 + $0x7c0] sm:$0xf]  ;;  %v3908_v51 = vld [vmem:[#allocation7 + $0x7cc] sm:$0xf0]  ;;  %v3373_v56 = vor.u32 %v3876_v49, %v3372_v48  ;;  %1799 = vmatpush.bf16.msrb.mxu0 %v3117_v52  ;;  %v109_v49 = vmul.f32 %v4220_v39, %v100_v27 }
  0x43   :  { %v3100_v53 = vld [vmem:[#allocation7 + $0x4a0] sm:$0xf]  ;;  %v3808_v54 = vld [vmem:[#allocation7 + $0x4ac] sm:$0xf0]  ;;  %v3501_v60 = vor.u32 %v3908_v51, %v3500_v50  ;;  %1812 = vmatpush.bf16.msrb.mxu1 %v3245_v55  ;;  %v127_v55 = vmul.f32 %v4226_v45, %v118_v33 }
  0x44   :  { %v3228_v57 = vld [vmem:[#allocation7 + $0x5a0] sm:$0xf]  ;;  %v3840_v58 = vld [vmem:[#allocation7 + $0x5ac] sm:$0xf0]  ;;  %v3101_v6 = vor.u32 %v3808_v54, %v3100_v53  ;;  %1825 = vmatpush.bf16.msrb.mxu2 %v3373_v56  ;;  %v4236_v53 = vstv %s4191_s22  ;;  %v170_v56 = vld [vmem:[#allocation6 + $0xd8] sm:$0xff] }
  0x45   :  { %v3356_v59 = vld [vmem:[#allocation7 + $0x6a0] sm:$0xf]  ;;  %v3872_v61 = vld [vmem:[#allocation7 + $0x6ac] sm:$0xf0]  ;;  %v3229_v13 = vor.u32 %v3840_v58, %v3228_v57  ;;  %1838 = vmatpush.bf16.msrb.mxu3 %v3501_v60 }
  0x46   :  { %v3484_v62 = vld [vmem:[#allocation7 + $0x7a0] sm:$0xf]  ;;  %v3904_v63 = vld [vmem:[#allocation7 + $0x7ac] sm:$0xf0]  ;;  %v3357_v14 = vor.u32 %v3872_v61, %v3356_v59  ;;  %1800 = vmatpush.bf16.msrb.mxu0 %v3101_v6  ;;  %v4244_v59 = vstv %s4197_s23  ;;  %v153_v61 = vmul.f32 %v4236_v53, %v144_v42 }
  0x47   :  { %v3084_v0 = vld [vmem:[#allocation7 + $0x480] sm:$0xf]  ;;  %v3804_v1 = vld [vmem:[#allocation7 + $0x48c] sm:$0xf0]  ;;  %v3485_v17 = vor.u32 %v3904_v63, %v3484_v62  ;;  %1813 = vmatpush.bf16.msrb.mxu1 %v3229_v13  ;;  %v98_v62 = vld [vmem:[#allocation6 + $0x8] sm:$0xff]  ;;  %v135_v13 = vadd.f32 %v127_v55, %v109_v49 }
  0x48   :  { %v4159_v2 = vld [vmem:[#allocation7 + $0x580] sm:$0xf]  ;;  %v4161_v3 = vld [vmem:[#allocation7 + $0x58c] sm:$0xf0]  ;;  %v3085_v22 = vor.u32 %v3804_v1, %v3084_v0  ;;  %1826 = vmatpush.bf16.msrb.mxu2 %v3357_v14  ;;  %v116_v63 = vld [vmem:[#allocation6 + $0x48] sm:$0xff]  ;;  %v179_v14 = vmul.f32 %v4244_v59, %v170_v56 }
  0x49   :  { %v4163_v4 = vld [vmem:[#allocation7 + $0x680] sm:$0xf]  ;;  %v4165_v5 = vld [vmem:[#allocation7 + $0x68c] sm:$0xf0]  ;;  %v3213_v23 = vor.u32 %v4161_v3, %v4159_v2  ;;  %1839 = vmatpush.bf16.msrb.mxu3 %v3485_v17  ;;  %v168_v17 = vld [vmem:[#allocation6 + $0xc8] sm:$0xff]  ;;  %v125_v27 = vmul.f32 %v4226_v45, %v116_v63 }
  0x4a   :  { %v4167_v7 = vld [vmem:[#allocation7 + $0x780] sm:$0xf]  ;;  %v4169_v8 = vld [vmem:[#allocation7 + $0x78c] sm:$0xf0]  ;;  %v3341_v24 = vor.u32 %v4165_v5, %v4163_v4  ;;  %1801 = vmatpush.bf16.msrb.mxu0 %v3085_v22  ;;  %v4322_v55 = vld [vmem:[#allocation7 + $0x2f0] sm:$0xf0] }
  0x4b   :  { %v4171_v9 = vld [vmem:[#allocation7 + $0x460] sm:$0xf]  ;;  %v4173_v10 = vld [vmem:[#allocation7 + $0x46c] sm:$0xf0]  ;;  %v3469_v28 = vor.u32 %v4169_v8, %v4167_v7  ;;  %1814 = vmatpush.bf16.msrb.mxu1 %v3213_v23  ;;  %v142_v8 = vld [vmem:[#allocation6 + $0x88] sm:$0xff] }
  0x4c   :  { %v4175_v11 = vld [vmem:[#allocation7 + $0x560] sm:$0xf]  ;;  %v4177_v12 = vld [vmem:[#allocation7 + $0x56c] sm:$0xf0]  ;;  %v3069_v29 = vor.u32 %v4173_v10, %v4171_v9  ;;  %1827 = vmatpush.bf16.msrb.mxu2 %v3341_v24  ;;  %v151_v33 = vmul.f32 %v4236_v53, %v142_v8  ;;  %v4324_v56 = vld [vmem:[#allocation7 + $0x3e4] sm:$0xf] }
  0x4d   :  { %v4181_v15 = vld [vmem:[#allocation7 + $0x660] sm:$0xf]  ;;  %v4183_v16 = vld [vmem:[#allocation7 + $0x66c] sm:$0xf0]  ;;  %v3197_v30 = vor.u32 %v4177_v12, %v4175_v11  ;;  %1840 = vmatpush.bf16.msrb.mxu3 %v3469_v28 }
  0x4e   :  { %v4187_v18 = vld [vmem:[#allocation7 + $0x760] sm:$0xf]  ;;  %v4189_v19 = vld [vmem:[#allocation7 + $0x76c] sm:$0xf0]  ;;  %v3325_v34 = vor.u32 %v4183_v16, %v4181_v15  ;;  %1802 = vmatpush.bf16.msrb.mxu0 %v3069_v29 }
  0x4f   :  { %v4193_v20 = vld [vmem:[#allocation7 + $0x440] sm:$0xf]  ;;  %v4195_v21 = vld [vmem:[#allocation7 + $0x44c] sm:$0xf0]  ;;  %v3453_v35 = vor.u32 %v4189_v19, %v4187_v18  ;;  %1815 = vmatpush.bf16.msrb.mxu1 %v3197_v30  ;;  %v4305_v18 = vld [vmem:[#allocation7 + $0xf0] sm:$0xf0] }
  0x50   :  { %v99_v25 = vld [vmem:[#allocation6 + $0x10] sm:$0xff]  ;;  %v97_v26 = vld [vmem:[#allocation6] sm:$0xff]  ;;  %v3053_v36 = vor.u32 %v4195_v21, %v4193_v20  ;;  %1828 = vmatpush.bf16.msrb.mxu2 %v3325_v34  ;;  %v177_v34 = vmul.f32 %v4244_v59, %v168_v17 }
  0x51   :  { %v117_v31 = vld [vmem:[#allocation6 + $0x50] sm:$0xff]  ;;  %v115_v32 = vld [vmem:[#allocation6 + $0x40] sm:$0xff]  ;;  %v108_v44 = vmul.f32 %v4220_v39, %v99_v25  ;;  %v106_v47 = vmul.f32 %v4220_v39, %v97_v26  ;;  %v107_v26 = vmul.f32 %v4220_v39, %v98_v62  ;;  %1841 = vmatpush.bf16.msrb.mxu3 %v3453_v35 }
  0x52   :  { %v4215_v37 = vld [vmem:[#allocation7 + $0x540] sm:$0xf]  ;;  %v4217_v38 = vld [vmem:[#allocation7 + $0x54c] sm:$0xf0]  ;;  %v126_v52 = vmul.f32 %v4226_v45, %v117_v31  ;;  %v124_v54 = vmul.f32 %v4226_v45, %v115_v32  ;;  %v161_v32 = vadd.f32 %v153_v61, %v135_v13  ;;  %v4307_v19 = vld [vmem:[#allocation7 + $0x1e4] sm:$0xf]  ;;  %1803 = vmatpush.bf16.msrb.mxu0 %v3053_v36 }
  0x53   :  { %v143_v40 = vld [vmem:[#allocation6 + $0x90] sm:$0xff]  ;;  %v141_v41 = vld [vmem:[#allocation6 + $0x80] sm:$0xff]  ;;  %v3181_v9 = vor.u32 %v4217_v38, %v4215_v37  ;;  %v133_v30 = vadd.f32 %v125_v27, %v107_v26  ;;  %v104_v26 = vld [vmem:[#allocation6 + $0x38] sm:$0xff] }
  0x54   :  { %v4222_v43 = vld [vmem:[#allocation7 + $0x640] sm:$0xf]  ;;  %v169_v46 = vld [vmem:[#allocation6 + $0xd0] sm:$0xff]  ;;  %v152_v58 = vmul.f32 %v4236_v53, %v143_v40  ;;  %v150_v60 = vmul.f32 %v4236_v53, %v141_v41  ;;  %v134_v0 = vadd.f32 %v126_v52, %v108_v44  ;;  %v132_v2 = vadd.f32 %v124_v54, %v106_v47  ;;  %v4299_v44 = vld [vmem:[#allocation7 + $0xe4] sm:$0xf] }
  0x55   :  { %v167_v48 = vld [vmem:[#allocation6 + $0xc0] sm:$0xff]  ;;  %v4230_v50 = vld [vmem:[#allocation7 + $0x64c] sm:$0xf0]  ;;  %v178_v1 = vmul.f32 %v4244_v59, %v169_v46  ;;  %v187_v46 = vadd.f32 %v179_v14, %v161_v32  ;;  %v4309_v35 = vld [vmem:[#allocation7 + $0x1f0] sm:$0xf0]  ;;  %v159_v52 = vadd.f32 %v151_v33, %v133_v30  ;;  %1816 = vmatpush.bf16.msrb.mxu1 %v3181_v9 }
  0x56   :  { %v4232_v51 = vld [vmem:[#allocation7 + $0x740] sm:$0xf]  ;;  %v4240_v57 = vld [vmem:[#allocation7 + $0x74c] sm:$0xf0]  ;;  %v176_v3 = vmul.f32 %v4244_v59, %v167_v48  ;;  %v3309_v10 = vor.u32 %v4230_v50, %v4222_v43  ;;  %v160_v22 = vadd.f32 %v152_v58, %v134_v0  ;;  %v158_v23 = vadd.f32 %v150_v60, %v132_v2  ;;  %v4320_v54 = vld [vmem:[#allocation7 + $0x2e4] sm:$0xf] }
  0x57   :  { %v4250_v4 = vld [vmem:[#allocation7 + $0x420] sm:$0xf]  ;;  %v4252_v5 = vld [vmem:[#allocation7 + $0x42c] sm:$0xf0]  ;;  %v3437_v29 = vor.u32 %v4240_v57, %v4232_v51  ;;  %v4326_v57 = vpack.c.bf16 %v187_v46, %v187_v46  ;;  %v185_v61 = vadd.f32 %v177_v34, %v159_v52  ;;  %v4337_v0 = vld [vmem:[#allocation7 + $0x3f0] sm:$0xf0]  ;;  %v2881_v17 = vor.u32 %v4320_v54, %v4322_v55 }
  0x58   :  { %v4254_v6 = vld [vmem:[#allocation7 + $0x520] sm:$0xf]  ;;  %v4256_v7 = vld [vmem:[#allocation7 + $0x52c] sm:$0xf0]  ;;  %v186_v11 = vadd.f32 %v178_v1, %v160_v22  ;;  %v184_v12 = vadd.f32 %v176_v3, %v158_v23  ;;  %v3037_v47 = vor.u32 %v4252_v5, %v4250_v4  ;;  %1829 = vmatpush.bf16.msrb.mxu2 %v3309_v10  ;;  %v4339_v1 = vld [vmem:[#allocation7 + $0xc4] sm:$0xf]  ;;  %v2625_v4 = vor.u32 %v4299_v44, %v4305_v18 }
  0x59   :  { %v4263_v15 = vld [vmem:[#allocation7 + $0x620] sm:$0xf]  ;;  %v4265_v16 = vld [vmem:[#allocation7 + $0x62c] sm:$0xf0]  ;;  %v3165_v48 = vor.u32 %v4256_v7, %v4254_v6  ;;  %1842 = vmatpush.bf16.msrb.mxu3 %v3437_v29  ;;  %v4341_v2 = vld [vmem:[#allocation7 + $0xd0] sm:$0xf0]  ;;  %v2753_v5 = vor.u32 %v4307_v19, %v4309_v35  ;;  %v4355_v9 = vpack.c.bf16 %v185_v61, %v185_v61  ;;  %v3009_v22 = vor.u32 %v4324_v56, %v4337_v0 }
  0x5a   :  { %v4267_v24 = vld [vmem:[#allocation7 + $0x720] sm:$0xf]  ;;  %v4269_v25 = vld [vmem:[#allocation7 + $0x72c] sm:$0xf0]  ;;  %v4314_v49 = vpack.c.bf16 %v186_v11, %v186_v11  ;;  %v4316_v50 = vpack.c.bf16 %v184_v12, %v184_v12  ;;  %v3293_v51 = vor.u32 %v4265_v16, %v4263_v15  ;;  %1793 = vmatmul.bf16.vlgmr.msra.gmra.mxu3 %v4326_v57  ;;  %v4351_v6 = vld [vmem:[#allocation7 + $0x1c4] sm:$0xf]  ;;  %1804 = vmatpush.bf16.msrb.mxu0 %v3037_v47 }
  0x5b   :  { %v4273_v28 = vld [vmem:[#allocation7 + $0x400] sm:$0xf]  ;;  %v4275_v31 = vld [vmem:[#allocation7 + $0x40c] sm:$0xf0]  ;;  %v3421_v20 = vor.u32 %v4269_v25, %v4267_v24  ;;  %v4353_v7 = vld [vmem:[#allocation7 + $0x1d0] sm:$0xf0]  ;;  %1817 = vmatpush.bf16.msrb.mxu1 %v3165_v48  ;;  %v2609_v23 = vor.u32 %v4339_v1, %v4341_v2 }
  0x5c   :  { %v4283_v37 = vld [vmem:[#allocation7 + $0x500] sm:$0xf]  ;;  %v4285_v38 = vld [vmem:[#allocation7 + $0x50c] sm:$0xf0]  ;;  %v3021_v21 = vor.u32 %v4275_v31, %v4273_v28  ;;  %1780 = vmatmul.bf16.vlgmr.msra.gmra.mxu2 %v4314_v49  ;;  %1754 = vmatmul.bf16.vlgmr.msra.gmra.mxu0 %v4316_v50  ;;  %v2737_v27 = vor.u32 %v4351_v6, %v4353_v7  ;;  %v122_v29 = vld [vmem:[#allocation6 + $0x78] sm:$0xff] }
  0x5d   :  { %v4287_v40 = vld [vmem:[#allocation7 + $0x600] sm:$0xf]  ;;  %v4289_v41 = vld [vmem:[#allocation7 + $0x60c] sm:$0xf0]  ;;  %v3149_v62 = vor.u32 %v4285_v38, %v4283_v37  ;;  %1830 = vmatpush.bf16.msrb.mxu2 %v3293_v51  ;;  %1843 = vmatpush.bf16.msrb.mxu3 %v3421_v20  ;;  %v148_v32 = vld [vmem:[#allocation6 + $0xb8] sm:$0xff]  ;;  %v131_v44 = vmul.f32 %v4226_v45, %v122_v29 }
  0x5e   :  { %v4295_v42 = vld [vmem:[#allocation7 + $0x700] sm:$0xf]  ;;  %v4297_v43 = vld [vmem:[#allocation7 + $0x70c] sm:$0xf0]  ;;  %v3277_v63 = vor.u32 %v4289_v41, %v4287_v40  ;;  %1767 = vmatmul.bf16.vlgmr.msra.gmra.mxu1 %v4355_v9  ;;  %v174_v33 = vld [vmem:[#allocation6 + $0xf8] sm:$0xff]  ;;  %1805 = vmatpush.bf16.msrb.mxu0 %v3021_v21  ;;  %v157_v46 = vmul.f32 %v4236_v53, %v148_v32 }
  0x5f   :  { %v103_v36 = vld [vmem:[#allocation6 + $0x30] sm:$0xff]  ;;  %v3405_v3 = vor.u32 %v4297_v43, %v4295_v42  ;;  %v101_v15 = vld [vmem:[#allocation6 + $0x20] sm:$0xff]  ;;  %v102_v11 = vld [vmem:[#allocation6 + $0x28] sm:$0xff]  ;;  %v113_v43 = vmul.f32 %v4220_v39, %v104_v26  ;;  %1818 = vmatpush.bf16.msrb.mxu1 %v3149_v62  ;;  %v183_v35 = vmul.f32 %v4244_v59, %v174_v33 }
  0x60   :  { %v121_v58 = vld [vmem:[#allocation6 + $0x70] sm:$0xff]  ;;  %v112_v10 = vmul.f32 %v4220_v39, %v103_v36  ;;  %v119_v16 = vld [vmem:[#allocation6 + $0x60] sm:$0xff]  ;;  %v110_v37 = vmul.f32 %v4220_v39, %v101_v15  ;;  %v120_v12 = vld [vmem:[#allocation6 + $0x68] sm:$0xff]  ;;  %v111_v51 = vmul.f32 %v4220_v39, %v102_v11 }
  0x61   :  { %v147_v60 = vld [vmem:[#allocation6 + $0xb0] sm:$0xff]  ;;  %v130_v13 = vmul.f32 %v4226_v45, %v121_v58  ;;  %v145_v24 = vld [vmem:[#allocation6 + $0xa0] sm:$0xff]  ;;  %v128_v38 = vmul.f32 %v4226_v45, %v119_v16  ;;  %v146_v47 = vld [vmem:[#allocation6 + $0xa8] sm:$0xff]  ;;  %1831 = vmatpush.bf16.msrb.mxu2 %v3277_v63  ;;  %1844 = vmatpush.bf16.msrb.mxu3 %v3405_v3  ;;  %v139_v55 = vadd.f32 %v131_v44, %v113_v43 }
  0x62   :  { %v173_v8 = vld [vmem:[#allocation6 + $0xf0] sm:$0xff]  ;;  %v156_v14 = vmul.f32 %v4236_v53, %v147_v60  ;;  %v171_v25 = vld [vmem:[#allocation6 + $0xe0] sm:$0xff]  ;;  %v154_v40 = vmul.f32 %v4236_v53, %v145_v24  ;;  %v172_v52 = vld [vmem:[#allocation6 + $0xe8] sm:$0xff]  ;;  %1850 = vmatpush.bf16.msra.mxu0 %v2625_v4  ;;  %v129_v56 = vmul.f32 %v4226_v45, %v120_v12  ;;  %v155_v61 = vmul.f32 %v4236_v53, %v146_v47 }
  0x63   :  { %v138_v28 = vadd.f32 %v130_v13, %v112_v10  ;;  %v182_v31 = vmul.f32 %v4244_v59, %v173_v8  ;;  %v180_v41 = vmul.f32 %v4244_v59, %v171_v25  ;;  %v3746_v30 = vld [vmem:[#allocation7 + $0x2c4] sm:$0xf]  ;;  %v2862_v34 = vld [vmem:[#allocation7 + $0x2d0] sm:$0xf0]  ;;  %v136_v19 = vadd.f32 %v128_v38, %v110_v37  ;;  %1863 = vmatpush.bf16.msra.mxu1 %v2753_v5 }
  0x64   :  { %v3778_v48 = vld [vmem:[#allocation7 + $0x3c4] sm:$0xf]  ;;  %v2990_v18 = vld [vmem:[#allocation7 + $0x3d0] sm:$0xf0]  ;;  %v2865_v20 = vor.u32 %v3746_v30, %v2862_v34  ;;  %v165_v1 = vadd.f32 %v157_v46, %v139_v55  ;;  %v137_v2 = vadd.f32 %v129_v56, %v111_v51  ;;  %v181_v3 = vmul.f32 %v4244_v59, %v172_v52 }
  0x65   :  { %v164_v42 = vadd.f32 %v156_v14, %v138_v28  ;;  %1876 = vmatpush.bf16.msra.mxu2 %v2881_v17  ;;  %v3678_v21 = vld [vmem:[#allocation7 + $0xa4] sm:$0xf]  ;;  %v2590_v36 = vld [vmem:[#allocation7 + $0xb0] sm:$0xf0]  ;;  %v162_v60 = vadd.f32 %v154_v40, %v136_v19  ;;  %1889 = vmatpush.bf16.msra.mxu3 %v3009_v22  ;;  %v2993_v62 = vor.u32 %v3778_v48, %v2990_v18 }
  0x66   :  { %v3710_v58 = vld [vmem:[#allocation7 + $0x1a4] sm:$0xf]  ;;  %v2718_v63 = vld [vmem:[#allocation7 + $0x1b0] sm:$0xf0]  ;;  %1851 = vmatpush.bf16.msra.mxu0 %v2609_v23  ;;  %v2593_v7 = vor.u32 %v3678_v21, %v2590_v36  ;;  %v191_v8 = vadd.f32 %v183_v35, %v165_v1  ;;  %v163_v10 = vadd.f32 %v155_v61, %v137_v2 }
  0x67   :  { %v190_v54 = vadd.f32 %v182_v31, %v164_v42  ;;  %v3742_v39 = vld [vmem:[#allocation7 + $0x2a4] sm:$0xf]  ;;  %v2846_v0 = vld [vmem:[#allocation7 + $0x2b0] sm:$0xf0]  ;;  %v188_v5 = vadd.f32 %v180_v41, %v162_v60  ;;  %1864 = vmatpush.bf16.msra.mxu1 %v2737_v27  ;;  %v2721_v53 = vor.u32 %v3710_v58, %v2718_v63 }
  0x68   :  { %v3774_v4 = vld [vmem:[#allocation7 + $0x3a4] sm:$0xf]  ;;  %v2974_v45 = vld [vmem:[#allocation7 + $0x3b0] sm:$0xf0]  ;;  %v2849_v13 = vor.u32 %v3742_v39, %v2846_v0  ;;  %v189_v59 = vadd.f32 %v181_v3, %v163_v10  ;;  %v4386_v26 = vpack.c.bf16 %v191_v8, %v191_v8 }
  0x69   :  { %v4382_v6 = vpack.c.bf16 %v190_v54, %v190_v54  ;;  %1877 = vmatpush.bf16.msra.mxu2 %v2865_v20  ;;  %v3674_v14 = vld [vmem:[#allocation7 + $0x84] sm:$0xf]  ;;  %v2574_v15 = vld [vmem:[#allocation7 + $0x90] sm:$0xf0]  ;;  %1890 = vmatpush.bf16.msra.mxu3 %v2993_v62  ;;  %v2977_v17 = vor.u32 %v3774_v4, %v2974_v45  ;;  %v4384_v22 = vpack.c.bf16 %v188_v5, %v188_v5 }
  0x6a   :  { %v3706_v16 = vld [vmem:[#allocation7 + $0x184] sm:$0xf]  ;;  %v2702_v24 = vld [vmem:[#allocation7 + $0x190] sm:$0xf0]  ;;  %1852 = vmatpush.bf16.msra.mxu0 %v2593_v7  ;;  %v4389_v27 = vpack.c.bf16 %v189_v59, %v189_v59  ;;  %v2577_v29 = vor.u32 %v3674_v14, %v2574_v15  ;;  %1845 = vmatmul.bf16.vlgmr.msrb.gmra.mxu3 %v4386_v26 }
  0x6b   :  { %v3738_v25 = vld [vmem:[#allocation7 + $0x284] sm:$0xf]  ;;  %v2830_v23 = vld [vmem:[#allocation7 + $0x290] sm:$0xf0]  ;;  %1865 = vmatpush.bf16.msra.mxu1 %v2721_v53  ;;  %v2705_v32 = vor.u32 %v3706_v16, %v2702_v24 }
  0x6c   :  { %v3770_v28 = vld [vmem:[#allocation7 + $0x384] sm:$0xf]  ;;  %v2958_v31 = vld [vmem:[#allocation7 + $0x390] sm:$0xf0]  ;;  %1832 = vmatmul.bf16.vlgmr.msrb.gmra.mxu2 %v4382_v6  ;;  %v2833_v33 = vor.u32 %v3738_v25, %v2830_v23  ;;  %1806 = vmatmul.bf16.vlgmr.msrb.gmra.mxu0 %v4384_v22 }
  0x6d   :  { %1878 = vmatpush.bf16.msra.mxu2 %v2849_v13  ;;  %v3670_v37 = vld [vmem:[#allocation7 + $0x64] sm:$0xf]  ;;  %v2558_v38 = vld [vmem:[#allocation7 + $0x70] sm:$0xf0]  ;;  %1891 = vmatpush.bf16.msra.mxu3 %v2977_v17  ;;  %v2961_v41 = vor.u32 %v3770_v28, %v2958_v31 }
  0x6e   :  { %v3702_v40 = vld [vmem:[#allocation7 + $0x164] sm:$0xf]  ;;  %v2686_v11 = vld [vmem:[#allocation7 + $0x170] sm:$0xf0]  ;;  %1819 = vmatmul.bf16.vlgmr.msrb.gmra.mxu1 %v4389_v27  ;;  %1853 = vmatpush.bf16.msra.mxu0 %v2577_v29  ;;  %v2561_v43 = vor.u32 %v3670_v37, %v2558_v38 }
  0x6f   :  { %v3734_v12 = vld [vmem:[#allocation7 + $0x264] sm:$0xf]  ;;  %v2814_v30 = vld [vmem:[#allocation7 + $0x270] sm:$0xf0]  ;;  %1866 = vmatpush.bf16.msra.mxu1 %v2705_v32  ;;  %v2689_v44 = vor.u32 %v3702_v40, %v2686_v11 }
  0x70   :  { %v3766_v34 = vld [vmem:[#allocation7 + $0x364] sm:$0xf]  ;;  %v2942_v42 = vld [vmem:[#allocation7 + $0x370] sm:$0xf0]  ;;  %v2817_v46 = vor.u32 %v3734_v12, %v2814_v30 }
  0x71   :  { %1879 = vmatpush.bf16.msra.mxu2 %v2833_v33  ;;  %v3666_v47 = vld [vmem:[#allocation7 + $0x44] sm:$0xf]  ;;  %v2542_v48 = vld [vmem:[#allocation7 + $0x50] sm:$0xf0]  ;;  %1892 = vmatpush.bf16.msra.mxu3 %v2961_v41  ;;  %v2945_v19 = vor.u32 %v3766_v34, %v2942_v42 }
  0x72   :  { %v3698_v18 = vld [vmem:[#allocation7 + $0x144] sm:$0xf]  ;;  %v2670_v35 = vld [vmem:[#allocation7 + $0x150] sm:$0xf0]  ;;  %1854 = vmatpush.bf16.msra.mxu0 %v2561_v43  ;;  %v2545_v56 = vor.u32 %v3666_v47, %v2542_v48 }
  0x73   :  { %v3730_v51 = vld [vmem:[#allocation7 + $0x244] sm:$0xf]  ;;  %v2798_v52 = vld [vmem:[#allocation7 + $0x250] sm:$0xf0]  ;;  %1867 = vmatpush.bf16.msra.mxu1 %v2689_v44  ;;  %v2673_v20 = vor.u32 %v3698_v18, %v2670_v35 }
  0x74   :  { %v3762_v54 = vld [vmem:[#allocation7 + $0x344] sm:$0xf]  ;;  %v2926_v55 = vld [vmem:[#allocation7 + $0x350] sm:$0xf0]  ;;  %v2801_v21 = vor.u32 %v3730_v51, %v2798_v52 }
  0x75   :  { %1880 = vmatpush.bf16.msra.mxu2 %v2817_v46  ;;  %v3662_v36 = vld [vmem:[#allocation7 + $0x24] sm:$0xf]  ;;  %v2526_v58 = vld [vmem:[#allocation7 + $0x30] sm:$0xf0]  ;;  %1893 = vmatpush.bf16.msra.mxu3 %v2945_v19  ;;  %v2929_v61 = vor.u32 %v3762_v54, %v2926_v55 }
  0x76   :  { %v3694_v60 = vld [vmem:[#allocation7 + $0x124] sm:$0xf]  ;;  %v2654_v62 = vld [vmem:[#allocation7 + $0x130] sm:$0xf0]  ;;  %1855 = vmatpush.bf16.msra.mxu0 %v2545_v56  ;;  %v2529_v2 = vor.u32 %v3662_v36, %v2526_v58 }
  0x77   :  { %v3726_v63 = vld [vmem:[#allocation7 + $0x224] sm:$0xf]  ;;  %v2782_v39 = vld [vmem:[#allocation7 + $0x230] sm:$0xf0]  ;;  %1868 = vmatpush.bf16.msra.mxu1 %v2673_v20  ;;  %v2657_v45 = vor.u32 %v3694_v60, %v2654_v62 }
  0x78   :  { %v3758_v0 = vld [vmem:[#allocation7 + $0x324] sm:$0xf]  ;;  %v2910_v1 = vld [vmem:[#allocation7 + $0x330] sm:$0xf0]  ;;  %v2785_v5 = vor.u32 %v3726_v63, %v2782_v39 }
  0x79   :  { %v3658_v3 = vld [vmem:[#allocation7 + $0x4] sm:$0xf]  ;;  %v2510_v4 = vld [vmem:[#allocation7 + $0x10] sm:$0xf0]  ;;  %1881 = vmatpush.bf16.msra.mxu2 %v2801_v21  ;;  %1894 = vmatpush.bf16.msra.mxu3 %v2929_v61  ;;  %v2913_v53 = vor.u32 %v3758_v0, %v2910_v1 }
  0x7a   :  { %v3690_v7 = vld [vmem:[#allocation7 + $0x104] sm:$0xf]  ;;  %v2638_v8 = vld [vmem:[#allocation7 + $0x110] sm:$0xf0]  ;;  %1856 = vmatpush.bf16.msra.mxu0 %v2529_v2  ;;  %v2513_v24 = vor.u32 %v3658_v3, %v2510_v4 }
  0x7b   :  { %v3722_v10 = vld [vmem:[#allocation7 + $0x204] sm:$0xf]  ;;  %v2766_v13 = vld [vmem:[#allocation7 + $0x210] sm:$0xf0]  ;;  %1869 = vmatpush.bf16.msra.mxu1 %v2657_v45  ;;  %v2641_v31 = vor.u32 %v3690_v7, %v2638_v8 }
  0x7c   :  { %v3754_v14 = vld [vmem:[#allocation7 + $0x304] sm:$0xf]  ;;  %v2894_v15 = vld [vmem:[#allocation7 + $0x310] sm:$0xf0]  ;;  %v2769_v29 = vor.u32 %v3722_v10, %v2766_v13 }
  0x7d   :  { %v3814_v16 = vld [vmem:[#allocation7 + $0x4e4] sm:$0xf]  ;;  %v3134_v17 = vld [vmem:[#allocation7 + $0x4f0] sm:$0xf0]  ;;  %1882 = vmatpush.bf16.msra.mxu2 %v2785_v5  ;;  %1895 = vmatpush.bf16.msra.mxu3 %v2913_v53  ;;  %v2897_v37 = vor.u32 %v3754_v14, %v2894_v15 }
  0x7e   :  { %v3846_v59 = vld [vmem:[#allocation7 + $0x5e4] sm:$0xf]  ;;  %v3262_v25 = vld [vmem:[#allocation7 + $0x5f0] sm:$0xf0]  ;;  %v3137_v38 = vor.u32 %v3814_v16, %v3134_v17  ;;  %1857 = vmatpush.bf16.msra.mxu0 %v2513_v24 }
  0x7f   :  { %v3878_v23 = vld [vmem:[#allocation7 + $0x6e4] sm:$0xf]  ;;  %v3390_v28 = vld [vmem:[#allocation7 + $0x6f0] sm:$0xf0]  ;;  %v3265_v40 = vor.u32 %v3846_v59, %v3262_v25  ;;  %1870 = vmatpush.bf16.msra.mxu1 %v2641_v31 }
  0x80   :  { %v3910_v32 = vld [vmem:[#allocation7 + $0x7e4] sm:$0xf]  ;;  %v3518_v33 = vld [vmem:[#allocation7 + $0x7f0] sm:$0xf0]  ;;  %v3393_v41 = vor.u32 %v3878_v23, %v3390_v28 }
  0x81   :  { %v3810_v11 = vld [vmem:[#allocation7 + $0x4c4] sm:$0xf]  ;;  %v3118_v12 = vld [vmem:[#allocation7 + $0x4d0] sm:$0xf0]  ;;  %v3521_v34 = vor.u32 %v3910_v32, %v3518_v33  ;;  %1883 = vmatpush.bf16.msra.mxu2 %v2769_v29  ;;  %1896 = vmatpush.bf16.msra.mxu3 %v2897_v37 }
  0x82   :  { %v3842_v30 = vld [vmem:[#allocation7 + $0x5c4] sm:$0xf]  ;;  %v3246_v42 = vld [vmem:[#allocation7 + $0x5d0] sm:$0xf0]  ;;  %1902 = vmatpush.bf16.msrb.mxu0 %v3137_v38  ;;  %v3121_v48 = vor.u32 %v3810_v11, %v3118_v12  ;;  %1871 = vmatmul.bf16.vlgmr.msra.gmra.mxu1 %v4355_v9 }
  0x83   :  { %v3874_v43 = vld [vmem:[#allocation7 + $0x6c4] sm:$0xf]  ;;  %v3374_v44 = vld [vmem:[#allocation7 + $0x6d0] sm:$0xf0]  ;;  %1915 = vmatpush.bf16.msrb.mxu1 %v3265_v40  ;;  %v3249_v18 = vor.u32 %v3842_v30, %v3246_v42  ;;  %1858 = vmatmul.bf16.vlgmr.msra.gmra.mxu0 %v4316_v50 }
  0x84   :  { %v3906_v46 = vld [vmem:[#allocation7 + $0x7c4] sm:$0xf]  ;;  %v3502_v47 = vld [vmem:[#allocation7 + $0x7d0] sm:$0xf0]  ;;  %v3377_v19 = vor.u32 %v3874_v43, %v3374_v44  ;;  %1884 = vmatmul.bf16.vlgmr.msra.gmra.mxu2 %v4314_v49  ;;  %1897 = vmatmul.bf16.vlgmr.msra.gmra.mxu3 %v4326_v57 }
  0x85   :  { %1928 = vmatpush.bf16.msrb.mxu2 %v3393_v41  ;;  %v3806_v35 = vld [vmem:[#allocation7 + $0x4a4] sm:$0xf]  ;;  %v3102_v51 = vld [vmem:[#allocation7 + $0x4b0] sm:$0xf0]  ;;  %1941 = vmatpush.bf16.msrb.mxu3 %v3521_v34  ;;  %v3505_v54 = vor.u32 %v3906_v46, %v3502_v47 }
  0x86   :  { %v3838_v52 = vld [vmem:[#allocation7 + $0x5a4] sm:$0xf]  ;;  %v3230_v55 = vld [vmem:[#allocation7 + $0x5b0] sm:$0xf0]  ;;  %1903 = vmatpush.bf16.msrb.mxu0 %v3121_v48  ;;  %v3105_v58 = vor.u32 %v3806_v35, %v3102_v51 }
  0x87   :  { %v3870_v56 = vld [vmem:[#allocation7 + $0x6a4] sm:$0xf]  ;;  %v3358_v20 = vld [vmem:[#allocation7 + $0x6b0] sm:$0xf0]  ;;  %1916 = vmatpush.bf16.msrb.mxu1 %v3249_v18  ;;  %v3233_v60 = vor.u32 %v3838_v52, %v3230_v55 }
  0x88   :  { %v3902_v21 = vld [vmem:[#allocation7 + $0x7a4] sm:$0xf]  ;;  %v3486_v36 = vld [vmem:[#allocation7 + $0x7b0] sm:$0xf0]  ;;  %v3361_v61 = vor.u32 %v3870_v56, %v3358_v20 }
  0x89   :  { %1929 = vmatpush.bf16.msrb.mxu2 %v3377_v19  ;;  %v3802_v62 = vld [vmem:[#allocation7 + $0x484] sm:$0xf]  ;;  %v3086_v63 = vld [vmem:[#allocation7 + $0x490] sm:$0xf0]  ;;  %1942 = vmatpush.bf16.msrb.mxu3 %v3505_v54  ;;  %v3489_v0 = vor.u32 %v3902_v21, %v3486_v36 }
  0x8a   :  { %v3834_v39 = vld [vmem:[#allocation7 + $0x584] sm:$0xf]  ;;  %v3214_v1 = vld [vmem:[#allocation7 + $0x590] sm:$0xf0]  ;;  %1904 = vmatpush.bf16.msrb.mxu0 %v3105_v58  ;;  %v3089_v5 = vor.u32 %v3802_v62, %v3086_v63  ;;  %v2628_v63 = vld [vmem:[#allocation7 + $0xe8] sm:$0xf] }
  0x8b   :  { %v3866_v2 = vld [vmem:[#allocation7 + $0x684] sm:$0xf]  ;;  %v3342_v3 = vld [vmem:[#allocation7 + $0x690] sm:$0xf0]  ;;  %1917 = vmatpush.bf16.msrb.mxu1 %v3233_v60  ;;  %v3217_v7 = vor.u32 %v3834_v39, %v3214_v1  ;;  %v3689_v39 = vld [vmem:[#allocation7 + $0xf4] sm:$0xf0] }
  0x8c   :  { %v3898_v4 = vld [vmem:[#allocation7 + $0x784] sm:$0xf]  ;;  %v3470_v45 = vld [vmem:[#allocation7 + $0x790] sm:$0xf0]  ;;  %v3345_v8 = vor.u32 %v3866_v2, %v3342_v3  ;;  %v3721_v2 = vld [vmem:[#allocation7 + $0x1f4] sm:$0xf0] }
  0x8d   :  { %1930 = vmatpush.bf16.msrb.mxu2 %v3361_v61  ;;  %v3798_v10 = vld [vmem:[#allocation7 + $0x464] sm:$0xf]  ;;  %v3070_v53 = vld [vmem:[#allocation7 + $0x470] sm:$0xf0]  ;;  %1943 = vmatpush.bf16.msrb.mxu3 %v3489_v0  ;;  %v3473_v14 = vor.u32 %v3898_v4, %v3470_v45  ;;  %v2756_v0 = vld [vmem:[#allocation7 + $0x1e8] sm:$0xf] }
  0x8e   :  { %v3830_v13 = vld [vmem:[#allocation7 + $0x564] sm:$0xf]  ;;  %v3198_v15 = vld [vmem:[#allocation7 + $0x570] sm:$0xf0]  ;;  %1905 = vmatpush.bf16.msrb.mxu0 %v3089_v5  ;;  %v3073_v25 = vor.u32 %v3798_v10, %v3070_v53  ;;  %v2884_v3 = vld [vmem:[#allocation7 + $0x2e8] sm:$0xf]  ;;  %v2629_v53 = vor.u32 %v3689_v39, %v2628_v63 }
  0x8f   :  { %v3862_v16 = vld [vmem:[#allocation7 + $0x664] sm:$0xf]  ;;  %v3326_v17 = vld [vmem:[#allocation7 + $0x670] sm:$0xf0]  ;;  %1918 = vmatpush.bf16.msrb.mxu1 %v3217_v7  ;;  %v3201_v23 = vor.u32 %v3830_v13, %v3198_v15  ;;  %v3753_v4 = vld [vmem:[#allocation7 + $0x2f4] sm:$0xf0]  ;;  %v2757_v13 = vor.u32 %v3721_v2, %v2756_v0 }
  0x90   :  { %v3894_v59 = vld [vmem:[#allocation7 + $0x764] sm:$0xf]  ;;  %v3454_v24 = vld [vmem:[#allocation7 + $0x770] sm:$0xf0]  ;;  %v3329_v28 = vor.u32 %v3862_v16, %v3326_v17  ;;  %v3012_v7 = vld [vmem:[#allocation7 + $0x3e8] sm:$0xf] }
  0x91   :  { %1931 = vmatpush.bf16.msrb.mxu2 %v3345_v8  ;;  %v3794_v31 = vld [vmem:[#allocation7 + $0x444] sm:$0xf]  ;;  %v3054_v29 = vld [vmem:[#allocation7 + $0x450] sm:$0xf0]  ;;  %1944 = vmatpush.bf16.msrb.mxu3 %v3473_v14  ;;  %v3457_v33 = vor.u32 %v3894_v59, %v3454_v24  ;;  %v3785_v8 = vld [vmem:[#allocation7 + $0x3f4] sm:$0xf0]  ;;  %v2885_v14 = vor.u32 %v3753_v4, %v2884_v3 }
  0x92   :  { %v3826_v32 = vld [vmem:[#allocation7 + $0x544] sm:$0xf]  ;;  %v3182_v37 = vld [vmem:[#allocation7 + $0x550] sm:$0xf0]  ;;  %1906 = vmatpush.bf16.msrb.mxu0 %v3073_v25  ;;  %v3057_v12 = vor.u32 %v3794_v31, %v3054_v29  ;;  %v2612_v15 = vld [vmem:[#allocation7 + $0xc8] sm:$0xf]  ;;  %v3013_v59 = vor.u32 %v3785_v8, %v3012_v7 }
  0x93   :  { %v3858_v38 = vld [vmem:[#allocation7 + $0x644] sm:$0xf]  ;;  %v3310_v40 = vld [vmem:[#allocation7 + $0x650] sm:$0xf0]  ;;  %1919 = vmatpush.bf16.msrb.mxu1 %v3201_v23  ;;  %v3185_v30 = vor.u32 %v3826_v32, %v3182_v37  ;;  %v3685_v16 = vld [vmem:[#allocation7 + $0xd4] sm:$0xf0] }
  0x94   :  { %v3890_v41 = vld [vmem:[#allocation7 + $0x744] sm:$0xf]  ;;  %v3438_v11 = vld [vmem:[#allocation7 + $0x750] sm:$0xf0]  ;;  %v3313_v34 = vor.u32 %v3858_v38, %v3310_v40  ;;  %v2740_v17 = vld [vmem:[#allocation7 + $0x1c8] sm:$0xf]  ;;  %v2613_v29 = vor.u32 %v3685_v16, %v2612_v15 }
  0x95   :  { %1932 = vmatpush.bf16.msrb.mxu2 %v3329_v28  ;;  %v3790_v42 = vld [vmem:[#allocation7 + $0x424] sm:$0xf]  ;;  %v3038_v43 = vld [vmem:[#allocation7 + $0x430] sm:$0xf0]  ;;  %1945 = vmatpush.bf16.msrb.mxu3 %v3457_v33  ;;  %v3441_v46 = vor.u32 %v3890_v41, %v3438_v11  ;;  %v3717_v24 = vld [vmem:[#allocation7 + $0x1d4] sm:$0xf0] }
  0x96   :  { %v3822_v44 = vld [vmem:[#allocation7 + $0x524] sm:$0xf]  ;;  %v3166_v47 = vld [vmem:[#allocation7 + $0x530] sm:$0xf0]  ;;  %1907 = vmatpush.bf16.msrb.mxu0 %v3057_v12  ;;  %v3041_v51 = vor.u32 %v3790_v42, %v3038_v43  ;;  %v2868_v25 = vld [vmem:[#allocation7 + $0x2c8] sm:$0xf]  ;;  %v2741_v32 = vor.u32 %v3717_v24, %v2740_v17 }
  0x97   :  { %v3854_v48 = vld [vmem:[#allocation7 + $0x624] sm:$0xf]  ;;  %v3294_v18 = vld [vmem:[#allocation7 + $0x630] sm:$0xf0]  ;;  %1920 = vmatpush.bf16.msrb.mxu1 %v3185_v30  ;;  %v3169_v55 = vor.u32 %v3822_v44, %v3166_v47  ;;  %v3749_v23 = vld [vmem:[#allocation7 + $0x2d4] sm:$0xf0] }
  0x98   :  { %v3886_v19 = vld [vmem:[#allocation7 + $0x724] sm:$0xf]  ;;  %v3422_v35 = vld [vmem:[#allocation7 + $0x730] sm:$0xf0]  ;;  %v3297_v56 = vor.u32 %v3854_v48, %v3294_v18  ;;  %v2996_v28 = vld [vmem:[#allocation7 + $0x3c8] sm:$0xf]  ;;  %v2869_v33 = vor.u32 %v3749_v23, %v2868_v25 }
  0x99   :  { %v3786_v52 = vld [vmem:[#allocation7 + $0x404] sm:$0xf]  ;;  %v3022_v54 = vld [vmem:[#allocation7 + $0x410] sm:$0xf0]  ;;  %1933 = vmatpush.bf16.msrb.mxu2 %v3313_v34  ;;  %1946 = vmatpush.bf16.msrb.mxu3 %v3441_v46  ;;  %v3425_v58 = vor.u32 %v3886_v19, %v3422_v35  ;;  %v3781_v31 = vld [vmem:[#allocation7 + $0x3d4] sm:$0xf0] }
  0x9a   :  { %v3818_v20 = vld [vmem:[#allocation7 + $0x504] sm:$0xf]  ;;  %v3150_v21 = vld [vmem:[#allocation7 + $0x510] sm:$0xf0]  ;;  %1908 = vmatpush.bf16.msrb.mxu0 %v3041_v51  ;;  %v3025_v1 = vor.u32 %v3786_v52, %v3022_v54  ;;  %v2596_v37 = vld [vmem:[#allocation7 + $0xa8] sm:$0xf]  ;;  %v2997_v41 = vor.u32 %v3781_v31, %v2996_v28 }
  0x9b   :  { %v3850_v36 = vld [vmem:[#allocation7 + $0x604] sm:$0xf]  ;;  %v3278_v60 = vld [vmem:[#allocation7 + $0x610] sm:$0xf0]  ;;  %1921 = vmatpush.bf16.msrb.mxu1 %v3169_v55  ;;  %v3153_v45 = vor.u32 %v3818_v20, %v3150_v21  ;;  %v3681_v38 = vld [vmem:[#allocation7 + $0xb4] sm:$0xf0] }
  0x9c   :  { %v3882_v61 = vld [vmem:[#allocation7 + $0x704] sm:$0xf]  ;;  %v3406_v62 = vld [vmem:[#allocation7 + $0x710] sm:$0xf0]  ;;  %v3281_v5 = vor.u32 %v3850_v36, %v3278_v60  ;;  %v2724_v40 = vld [vmem:[#allocation7 + $0x1a8] sm:$0xf]  ;;  %v2597_v43 = vor.u32 %v3681_v38, %v2596_v37 }
  0x9d   :  { %1934 = vmatpush.bf16.msrb.mxu2 %v3297_v56  ;;  %1947 = vmatpush.bf16.msrb.mxu3 %v3425_v58  ;;  %v3409_v10 = vor.u32 %v3882_v61, %v3406_v62  ;;  %v3713_v11 = vld [vmem:[#allocation7 + $0x1b4] sm:$0xf0]  ;;  %v2852_v12 = vld [vmem:[#allocation7 + $0x2a8] sm:$0xf] }
  0x9e   :  { %1909 = vmatpush.bf16.msrb.mxu0 %v3025_v1  ;;  %v3745_v30 = vld [vmem:[#allocation7 + $0x2b4] sm:$0xf0]  ;;  %v2980_v34 = vld [vmem:[#allocation7 + $0x3a8] sm:$0xf]  ;;  %v2725_v44 = vor.u32 %v3713_v11, %v2724_v40 }
  0x9f   :  { %1922 = vmatpush.bf16.msrb.mxu1 %v3153_v45  ;;  %v3777_v42 = vld [vmem:[#allocation7 + $0x3b4] sm:$0xf0]  ;;  %v2853_v46 = vor.u32 %v3745_v30, %v2852_v12  ;;  %v2580_v47 = vld [vmem:[#allocation7 + $0x88] sm:$0xf] }
  0xa0   :  { %v3677_v48 = vld [vmem:[#allocation7 + $0x94] sm:$0xf0]  ;;  %v2708_v18 = vld [vmem:[#allocation7 + $0x188] sm:$0xf]  ;;  %v2981_v19 = vor.u32 %v3777_v42, %v2980_v34 }
  0xa1   :  { %1935 = vmatpush.bf16.msrb.mxu2 %v3281_v5  ;;  %1948 = vmatpush.bf16.msrb.mxu3 %v3409_v10  ;;  %v3709_v35 = vld [vmem:[#allocation7 + $0x194] sm:$0xf0]  ;;  %v2836_v51 = vld [vmem:[#allocation7 + $0x288] sm:$0xf]  ;;  %v2581_v56 = vor.u32 %v3677_v48, %v2580_v47 }
  0xa2   :  { %1954 = vmatpush.bf16.msra.mxu0 %v2629_v53  ;;  %1923 = vmatmul.bf16.vlgmr.msrb.gmra.mxu1 %v4389_v27  ;;  %v3741_v52 = vld [vmem:[#allocation7 + $0x294] sm:$0xf0]  ;;  %v2964_v54 = vld [vmem:[#allocation7 + $0x388] sm:$0xf]  ;;  %v2709_v20 = vor.u32 %v3709_v35, %v2708_v18 }
  0xa3   :  { %1967 = vmatpush.bf16.msra.mxu1 %v2757_v13  ;;  %1910 = vmatmul.bf16.vlgmr.msrb.gmra.mxu0 %v4384_v22  ;;  %v3773_v55 = vld [vmem:[#allocation7 + $0x394] sm:$0xf0]  ;;  %v2837_v21 = vor.u32 %v3741_v52, %v2836_v51  ;;  %v2564_v36 = vld [vmem:[#allocation7 + $0x68] sm:$0xf] }
  0xa4   :  { %1936 = vmatmul.bf16.vlgmr.msrb.gmra.mxu2 %v4382_v6  ;;  %1949 = vmatmul.bf16.vlgmr.msrb.gmra.mxu3 %v4386_v26  ;;  %v3673_v58 = vld [vmem:[#allocation7 + $0x74] sm:$0xf0]  ;;  %v2692_v60 = vld [vmem:[#allocation7 + $0x168] sm:$0xf]  ;;  %v2965_v61 = vor.u32 %v3773_v55, %v2964_v54 }
  0xa5   :  { %1980 = vmatpush.bf16.msra.mxu2 %v2885_v14  ;;  %1993 = vmatpush.bf16.msra.mxu3 %v3013_v59  ;;  %v3705_v62 = vld [vmem:[#allocation7 + $0x174] sm:$0xf0]  ;;  %v2820_v63 = vld [vmem:[#allocation7 + $0x268] sm:$0xf]  ;;  %v2565_v2 = vor.u32 %v3673_v58, %v2564_v36 }
  0xa6   :  { %1955 = vmatpush.bf16.msra.mxu0 %v2613_v29  ;;  %v3737_v39 = vld [vmem:[#allocation7 + $0x274] sm:$0xf0]  ;;  %v2948_v0 = vld [vmem:[#allocation7 + $0x368] sm:$0xf]  ;;  %v2693_v3 = vor.u32 %v3705_v62, %v2692_v60 }
  0xa7   :  { %1968 = vmatpush.bf16.msra.mxu1 %v2741_v32  ;;  %v3769_v1 = vld [vmem:[#allocation7 + $0x374] sm:$0xf0]  ;;  %v2821_v4 = vor.u32 %v3737_v39, %v2820_v63  ;;  %v2548_v45 = vld [vmem:[#allocation7 + $0x48] sm:$0xf] }
  0xa8   :  { %v3669_v5 = vld [vmem:[#allocation7 + $0x54] sm:$0xf0]  ;;  %v2676_v7 = vld [vmem:[#allocation7 + $0x148] sm:$0xf]  ;;  %v2949_v8 = vor.u32 %v3769_v1, %v2948_v0 }
  0xa9   :  { %1981 = vmatpush.bf16.msra.mxu2 %v2869_v33  ;;  %1994 = vmatpush.bf16.msra.mxu3 %v2997_v41  ;;  %v3701_v10 = vld [vmem:[#allocation7 + $0x154] sm:$0xf0]  ;;  %v2804_v53 = vld [vmem:[#allocation7 + $0x248] sm:$0xf]  ;;  %v2549_v16 = vor.u32 %v3669_v5, %v2548_v45 }
  0xaa   :  { %1956 = vmatpush.bf16.msra.mxu0 %v2597_v43  ;;  %v3733_v13 = vld [vmem:[#allocation7 + $0x254] sm:$0xf0]  ;;  %v2932_v14 = vld [vmem:[#allocation7 + $0x348] sm:$0xf]  ;;  %v2677_v17 = vor.u32 %v3701_v10, %v2676_v7 }
  0xab   :  { %1969 = vmatpush.bf16.msra.mxu1 %v2725_v44  ;;  %v3765_v15 = vld [vmem:[#allocation7 + $0x354] sm:$0xf0]  ;;  %v2805_v59 = vor.u32 %v3733_v13, %v2804_v53  ;;  %v2532_v24 = vld [vmem:[#allocation7 + $0x28] sm:$0xf] }
  0xac   :  { %v3665_v25 = vld [vmem:[#allocation7 + $0x34] sm:$0xf0]  ;;  %v2660_v23 = vld [vmem:[#allocation7 + $0x128] sm:$0xf]  ;;  %v2933_v28 = vor.u32 %v3765_v15, %v2932_v14 }
  0xad   :  { %1982 = vmatpush.bf16.msra.mxu2 %v2853_v46  ;;  %1995 = vmatpush.bf16.msra.mxu3 %v2981_v19  ;;  %v3697_v31 = vld [vmem:[#allocation7 + $0x134] sm:$0xf0]  ;;  %v2788_v29 = vld [vmem:[#allocation7 + $0x228] sm:$0xf]  ;;  %v2533_v38 = vor.u32 %v3665_v25, %v2532_v24 }
  0xae   :  { %1957 = vmatpush.bf16.msra.mxu0 %v2581_v56  ;;  %v3729_v32 = vld [vmem:[#allocation7 + $0x234] sm:$0xf0]  ;;  %v2916_v33 = vld [vmem:[#allocation7 + $0x328] sm:$0xf]  ;;  %v2661_v11 = vor.u32 %v3697_v31, %v2660_v23 }
  0xaf   :  { %1970 = vmatpush.bf16.msra.mxu1 %v2709_v20  ;;  %v3761_v37 = vld [vmem:[#allocation7 + $0x334] sm:$0xf0]  ;;  %v2516_v40 = vld [vmem:[#allocation7 + $0x8] sm:$0xf]  ;;  %v2789_v12 = vor.u32 %v3729_v32, %v2788_v29 }
  0xb0   :  { %v3661_v41 = vld [vmem:[#allocation7 + $0x14] sm:$0xf0]  ;;  %v2644_v30 = vld [vmem:[#allocation7 + $0x108] sm:$0xf]  ;;  %v2917_v43 = vor.u32 %v3761_v37, %v2916_v33 }
  0xb1   :  { %1983 = vmatpush.bf16.msra.mxu2 %v2837_v21  ;;  %1996 = vmatpush.bf16.msra.mxu3 %v2965_v61  ;;  %v3693_v34 = vld [vmem:[#allocation7 + $0x114] sm:$0xf0]  ;;  %v2772_v42 = vld [vmem:[#allocation7 + $0x208] sm:$0xf]  ;;  %v2517_v35 = vor.u32 %v3661_v41, %v2516_v40 }
  0xb2   :  { %1958 = vmatpush.bf16.msra.mxu0 %v2565_v2  ;;  %v3725_v44 = vld [vmem:[#allocation7 + $0x214] sm:$0xf0]  ;;  %v2900_v46 = vld [vmem:[#allocation7 + $0x308] sm:$0xf]  ;;  %v2645_v55 = vor.u32 %v3693_v34, %v2644_v30 }
  0xb3   :  { %1971 = vmatpush.bf16.msra.mxu1 %v2693_v3  ;;  %v3757_v47 = vld [vmem:[#allocation7 + $0x314] sm:$0xf0]  ;;  %v3140_v48 = vld [vmem:[#allocation7 + $0x4e8] sm:$0xf]  ;;  %v2773_v56 = vor.u32 %v3725_v44, %v2772_v42 }
  0xb4   :  { %v3817_v18 = vld [vmem:[#allocation7 + $0x4f4] sm:$0xf0]  ;;  %v3268_v19 = vld [vmem:[#allocation7 + $0x5e8] sm:$0xf]  ;;  %v2901_v36 = vor.u32 %v3757_v47, %v2900_v46 }
  0xb5   :  { %1984 = vmatpush.bf16.msra.mxu2 %v2821_v4  ;;  %1997 = vmatpush.bf16.msra.mxu3 %v2949_v8  ;;  %v3849_v51 = vld [vmem:[#allocation7 + $0x5f4] sm:$0xf0]  ;;  %v3396_v52 = vld [vmem:[#allocation7 + $0x6e8] sm:$0xf]  ;;  %v3141_v58 = vor.u32 %v3817_v18, %v3140_v48 }
  0xb6   :  { %1959 = vmatpush.bf16.msra.mxu0 %v2549_v16  ;;  %v3881_v54 = vld [vmem:[#allocation7 + $0x6f4] sm:$0xf0]  ;;  %v3524_v20 = vld [vmem:[#allocation7 + $0x7e8] sm:$0xf]  ;;  %v3269_v60 = vor.u32 %v3849_v51, %v3268_v19 }
  0xb7   :  { %1972 = vmatpush.bf16.msra.mxu1 %v2677_v17  ;;  %v3913_v21 = vld [vmem:[#allocation7 + $0x7f4] sm:$0xf0]  ;;  %v3397_v61 = vor.u32 %v3881_v54, %v3396_v52  ;;  %v3124_v62 = vld [vmem:[#allocation7 + $0x4c8] sm:$0xf] }
  0xb8   :  { %v3813_v63 = vld [vmem:[#allocation7 + $0x4d4] sm:$0xf0]  ;;  %v3252_v39 = vld [vmem:[#allocation7 + $0x5c8] sm:$0xf]  ;;  %v3525_v0 = vor.u32 %v3913_v21, %v3524_v20 }
  0xb9   :  { %1985 = vmatpush.bf16.msra.mxu2 %v2805_v59  ;;  %1998 = vmatpush.bf16.msra.mxu3 %v2933_v28  ;;  %v3845_v1 = vld [vmem:[#allocation7 + $0x5d4] sm:$0xf0]  ;;  %v3380_v2 = vld [vmem:[#allocation7 + $0x6c8] sm:$0xf]  ;;  %v3125_v5 = vor.u32 %v3813_v63, %v3124_v62 }
  0xba   :  { %1960 = vmatpush.bf16.msra.mxu0 %v2533_v38  ;;  %v3877_v3 = vld [vmem:[#allocation7 + $0x6d4] sm:$0xf0]  ;;  %v3508_v4 = vld [vmem:[#allocation7 + $0x7c8] sm:$0xf]  ;;  %v3253_v7 = vor.u32 %v3845_v1, %v3252_v39 }
  0xbb   :  { %1973 = vmatpush.bf16.msra.mxu1 %v2661_v11  ;;  %v3909_v45 = vld [vmem:[#allocation7 + $0x7d4] sm:$0xf0]  ;;  %v3381_v8 = vor.u32 %v3877_v3, %v3380_v2  ;;  %v3108_v10 = vld [vmem:[#allocation7 + $0x4a8] sm:$0xf] }
  0xbc   :  { %v3809_v53 = vld [vmem:[#allocation7 + $0x4b4] sm:$0xf0]  ;;  %v3236_v13 = vld [vmem:[#allocation7 + $0x5a8] sm:$0xf]  ;;  %v3509_v14 = vor.u32 %v3909_v45, %v3508_v4 }
  0xbd   :  { %1986 = vmatpush.bf16.msra.mxu2 %v2789_v12  ;;  %1999 = vmatpush.bf16.msra.mxu3 %v2917_v43  ;;  %v3841_v15 = vld [vmem:[#allocation7 + $0x5b4] sm:$0xf0]  ;;  %v3364_v16 = vld [vmem:[#allocation7 + $0x6a8] sm:$0xf]  ;;  %v3109_v25 = vor.u32 %v3809_v53, %v3108_v10 }
  0xbe   :  { %1961 = vmatpush.bf16.msra.mxu0 %v2517_v35  ;;  %v3873_v17 = vld [vmem:[#allocation7 + $0x6b4] sm:$0xf0]  ;;  %v3492_v59 = vld [vmem:[#allocation7 + $0x7a8] sm:$0xf]  ;;  %v3237_v23 = vor.u32 %v3841_v15, %v3236_v13 }
  0xbf   :  { %1974 = vmatpush.bf16.msra.mxu1 %v2645_v55  ;;  %v3905_v24 = vld [vmem:[#allocation7 + $0x7b4] sm:$0xf0]  ;;  %v3365_v28 = vor.u32 %v3873_v17, %v3364_v16  ;;  %v3092_v31 = vld [vmem:[#allocation7 + $0x488] sm:$0xf] }
  0xc0   :  { %v3805_v29 = vld [vmem:[#allocation7 + $0x494] sm:$0xf0]  ;;  %v3220_v32 = vld [vmem:[#allocation7 + $0x588] sm:$0xf]  ;;  %v3493_v33 = vor.u32 %v3905_v24, %v3492_v59 }
  0xc1   :  { %1987 = vmatpush.bf16.msra.mxu2 %v2773_v56  ;;  %2000 = vmatpush.bf16.msra.mxu3 %v2901_v36  ;;  %v3837_v37 = vld [vmem:[#allocation7 + $0x594] sm:$0xf0]  ;;  %v3348_v38 = vld [vmem:[#allocation7 + $0x688] sm:$0xf]  ;;  %v3093_v12 = vor.u32 %v3805_v29, %v3092_v31  ;;  %v4406_v29 = vld [vmem:[#allocation9] sm:$0xf] }
  0xc2   :  { %2006 = vmatpush.bf16.msrb.mxu0 %v3141_v58  ;;  %1975 = vmatmul.bf16.vlgmr.msra.gmra.mxu1 %v4355_v9  ;;  %v3869_v40 = vld [vmem:[#allocation7 + $0x694] sm:$0xf0]  ;;  %v3476_v41 = vld [vmem:[#allocation7 + $0x788] sm:$0xf]  ;;  %v3221_v30 = vor.u32 %v3837_v37, %v3220_v32  ;;  %v3687_v32 = vld [vmem:[#allocation7 + $0xec] sm:$0xf] }
  0xc3   :  { %2019 = vmatpush.bf16.msrb.mxu1 %v3269_v60  ;;  %1962 = vmatmul.bf16.vlgmr.msra.gmra.mxu0 %v4316_v50  ;;  %v3901_v11 = vld [vmem:[#allocation7 + $0x794] sm:$0xf0]  ;;  %v3349_v34 = vor.u32 %v3869_v40, %v3348_v38  ;;  %v3076_v42 = vld [vmem:[#allocation7 + $0x468] sm:$0xf]  ;;  %v3719_v37 = vld [vmem:[#allocation7 + $0x1ec] sm:$0xf] }
  0xc4   :  { %1988 = vmatmul.bf16.vlgmr.msra.gmra.mxu2 %v4314_v49  ;;  %2001 = vmatmul.bf16.vlgmr.msra.gmra.mxu3 %v4326_v57  ;;  %v3801_v43 = vld [vmem:[#allocation7 + $0x474] sm:$0xf0]  ;;  %v3204_v44 = vld [vmem:[#allocation7 + $0x568] sm:$0xf]  ;;  %v3477_v46 = vor.u32 %v3901_v11, %v3476_v41  ;;  %v2758_v40 = vld [vmem:[#allocation7 + $0x1f8] sm:$0xf0] }
  0xc5   :  { %2032 = vmatpush.bf16.msrb.mxu2 %v3397_v61  ;;  %2045 = vmatpush.bf16.msrb.mxu3 %v3525_v0  ;;  %v3833_v47 = vld [vmem:[#allocation7 + $0x574] sm:$0xf0]  ;;  %v3332_v48 = vld [vmem:[#allocation7 + $0x668] sm:$0xf]  ;;  %v3077_v51 = vor.u32 %v3801_v43, %v3076_v42  ;;  %v3751_v41 = vld [vmem:[#allocation7 + $0x2ec] sm:$0xf] }
  0xc6   :  { %2007 = vmatpush.bf16.msrb.mxu0 %v3125_v5  ;;  %v3865_v18 = vld [vmem:[#allocation7 + $0x674] sm:$0xf0]  ;;  %v3460_v19 = vld [vmem:[#allocation7 + $0x768] sm:$0xf]  ;;  %v3205_v52 = vor.u32 %v3833_v47, %v3204_v44  ;;  %v2886_v11 = vld [vmem:[#allocation7 + $0x2f8] sm:$0xf0]  ;;  %v2761_v47 = vor.u32 %v3719_v37, %v2758_v40 }
  0xc7   :  { %2020 = vmatpush.bf16.msrb.mxu1 %v3253_v7  ;;  %v3897_v35 = vld [vmem:[#allocation7 + $0x774] sm:$0xf0]  ;;  %v3333_v54 = vor.u32 %v3865_v18, %v3332_v48  ;;  %v3060_v55 = vld [vmem:[#allocation7 + $0x448] sm:$0xf]  ;;  %v3014_v42 = vld [vmem:[#allocation7 + $0x3f8] sm:$0xf0]  ;;  %v2889_v48 = vor.u32 %v3751_v41, %v2886_v11 }
  0xc8   :  { %v3797_v56 = vld [vmem:[#allocation7 + $0x454] sm:$0xf0]  ;;  %v3188_v20 = vld [vmem:[#allocation7 + $0x548] sm:$0xf]  ;;  %v3461_v21 = vor.u32 %v3897_v35, %v3460_v19  ;;  %v458_v43 = vperm.slane %v4406_v29, 0 }
  0xc9   :  { %2033 = vmatpush.bf16.msrb.mxu2 %v3381_v8  ;;  %2046 = vmatpush.bf16.msrb.mxu3 %v3509_v14  ;;  %v3829_v36 = vld [vmem:[#allocation7 + $0x554] sm:$0xf0]  ;;  %v3316_v58 = vld [vmem:[#allocation7 + $0x648] sm:$0xf]  ;;  %v3061_v63 = vor.u32 %v3797_v56, %v3060_v55  ;;  %v3683_v18 = vld [vmem:[#allocation7 + $0xcc] sm:$0xf] }
  0xca   :  { %2008 = vmatpush.bf16.msrb.mxu0 %v3109_v25  ;;  %v3861_v60 = vld [vmem:[#allocation7 + $0x654] sm:$0xf0]  ;;  %v3444_v61 = vld [vmem:[#allocation7 + $0x748] sm:$0xf]  ;;  %v3189_v39 = vor.u32 %v3829_v36, %v3188_v20  ;;  %v2614_v19 = vld [vmem:[#allocation7 + $0xd8] sm:$0xf0] }
  0xcb   :  { %2021 = vmatpush.bf16.msrb.mxu1 %v3237_v23  ;;  %v3893_v62 = vld [vmem:[#allocation7 + $0x754] sm:$0xf0]  ;;  %v3317_v0 = vor.u32 %v3861_v60, %v3316_v58  ;;  %v3044_v1 = vld [vmem:[#allocation7 + $0x428] sm:$0xf]  ;;  %v3715_v35 = vld [vmem:[#allocation7 + $0x1cc] sm:$0xf]  ;;  %v2617_v58 = vor.u32 %v3683_v18, %v2614_v19 }
  0xcc   :  { %v3793_v2 = vld [vmem:[#allocation7 + $0x434] sm:$0xf0]  ;;  %v3172_v3 = vld [vmem:[#allocation7 + $0x528] sm:$0xf]  ;;  %v3445_v4 = vor.u32 %v3893_v62, %v3444_v61  ;;  %v3747_v55 = vld [vmem:[#allocation7 + $0x2cc] sm:$0xf] }
  0xcd   :  { %2034 = vmatpush.bf16.msrb.mxu2 %v3365_v28  ;;  %2047 = vmatpush.bf16.msrb.mxu3 %v3493_v33  ;;  %v3825_v45 = vld [vmem:[#allocation7 + $0x534] sm:$0xf0]  ;;  %v3300_v5 = vld [vmem:[#allocation7 + $0x628] sm:$0xf]  ;;  %v3045_v53 = vor.u32 %v3793_v2, %v3044_v1  ;;  %v2630_v33 = vld [vmem:[#allocation7 + $0xf8] sm:$0xf0] }
  0xce   :  { %2009 = vmatpush.bf16.msrb.mxu0 %v3093_v12  ;;  %v3857_v7 = vld [vmem:[#allocation7 + $0x634] sm:$0xf0]  ;;  %v3428_v8 = vld [vmem:[#allocation7 + $0x728] sm:$0xf]  ;;  %v3173_v16 = vor.u32 %v3825_v45, %v3172_v3  ;;  %v2870_v56 = vld [vmem:[#allocation7 + $0x2d8] sm:$0xf0] }
  0xcf   :  { %2022 = vmatpush.bf16.msrb.mxu1 %v3221_v30  ;;  %v3889_v10 = vld [vmem:[#allocation7 + $0x734] sm:$0xf0]  ;;  %v3028_v13 = vld [vmem:[#allocation7 + $0x408] sm:$0xf]  ;;  %v3301_v17 = vor.u32 %v3857_v7, %v3300_v5  ;;  %v2998_v36 = vld [vmem:[#allocation7 + $0x3d8] sm:$0xf0]  ;;  %v2873_v61 = vor.u32 %v3747_v55, %v2870_v56 }
  0xd0   :  { %v3789_v14 = vld [vmem:[#allocation7 + $0x414] sm:$0xf0]  ;;  %v3156_v15 = vld [vmem:[#allocation7 + $0x508] sm:$0xf]  ;;  %v3429_v23 = vor.u32 %v3889_v10, %v3428_v8  ;;  %v2726_v3 = vld [vmem:[#allocation7 + $0x1b8] sm:$0xf0] }
  0xd1   :  { %2035 = vmatpush.bf16.msrb.mxu2 %v3349_v34  ;;  %2048 = vmatpush.bf16.msrb.mxu3 %v3477_v46  ;;  %v3821_v59 = vld [vmem:[#allocation7 + $0x514] sm:$0xf0]  ;;  %v3284_v24 = vld [vmem:[#allocation7 + $0x608] sm:$0xf]  ;;  %v3029_v38 = vor.u32 %v3789_v14, %v3028_v13  ;;  %v3783_v34 = vld [vmem:[#allocation7 + $0x3ec] sm:$0xf]  ;;  %v2633_v46 = vor.u32 %v3687_v32, %v2630_v33 }
  0xd2   :  { %2010 = vmatpush.bf16.msrb.mxu0 %v3077_v51  ;;  %v3853_v25 = vld [vmem:[#allocation7 + $0x614] sm:$0xf0]  ;;  %v3412_v28 = vld [vmem:[#allocation7 + $0x708] sm:$0xf]  ;;  %v3157_v12 = vor.u32 %v3821_v59, %v3156_v15  ;;  %v3017_v51 = vor.u32 %v3783_v34, %v3014_v42  ;;  %v2854_v45 = vld [vmem:[#allocation7 + $0x2b8] sm:$0xf0] }
  0xd3   :  { %2023 = vmatpush.bf16.msrb.mxu1 %v3205_v52  ;;  %v3885_v31 = vld [vmem:[#allocation7 + $0x714] sm:$0xf0]  ;;  %v3285_v30 = vor.u32 %v3853_v25, %v3284_v24  ;;  %v3775_v7 = vld [vmem:[#allocation7 + $0x3ac] sm:$0xf]  ;;  %v2982_v8 = vld [vmem:[#allocation7 + $0x3b8] sm:$0xf0] }
  0xd4   :  { %v3413_v44 = vor.u32 %v3885_v31, %v3412_v28  ;;  %v3707_v59 = vld [vmem:[#allocation7 + $0x18c] sm:$0xf]  ;;  %v2985_v24 = vor.u32 %v3775_v7, %v2982_v8  ;;  %v2710_v28 = vld [vmem:[#allocation7 + $0x198] sm:$0xf0] }
  0xd5   :  { %2036 = vmatpush.bf16.msrb.mxu2 %v3333_v54  ;;  %2049 = vmatpush.bf16.msrb.mxu3 %v3461_v21  ;;  %v2742_v54 = vld [vmem:[#allocation7 + $0x1d8] sm:$0xf0]  ;;  %v3779_v21 = vld [vmem:[#allocation7 + $0x3cc] sm:$0xf]  ;;  %v2713_v40 = vor.u32 %v3707_v59, %v2710_v28 }
  0xd6   :  { %2011 = vmatpush.bf16.msrb.mxu0 %v3061_v63  ;;  %v2745_v60 = vor.u32 %v3715_v35, %v2742_v54  ;;  %v3679_v63 = vld [vmem:[#allocation7 + $0xac] sm:$0xf]  ;;  %v3001_v1 = vor.u32 %v3779_v21, %v2998_v36  ;;  %v2838_v32 = vld [vmem:[#allocation7 + $0x298] sm:$0xf0] }
  0xd7   :  { %2024 = vmatpush.bf16.msrb.mxu1 %v3189_v39  ;;  %v2598_v39 = vld [vmem:[#allocation7 + $0xb8] sm:$0xf0]  ;;  %v3739_v31 = vld [vmem:[#allocation7 + $0x28c] sm:$0xf] }
  0xd8   :  { %v3771_v33 = vld [vmem:[#allocation7 + $0x38c] sm:$0xf]  ;;  %v2966_v37 = vld [vmem:[#allocation7 + $0x398] sm:$0xf0]  ;;  %v2841_v41 = vor.u32 %v3739_v31, %v2838_v32 }
  0xd9   :  { %2037 = vmatpush.bf16.msrb.mxu2 %v3317_v0  ;;  %2050 = vmatpush.bf16.msrb.mxu3 %v3445_v4  ;;  %v1755_v52 = vpop.f32.mrf.mxu0  ;;  %v3711_v0 = vld [vmem:[#allocation7 + $0x1ac] sm:$0xf]  ;;  %v2969_v42 = vor.u32 %v3771_v33, %v2966_v37  ;;  %v2950_v18 = vld [vmem:[#allocation7 + $0x378] sm:$0xf0] }
  0xda   :  { %2012 = vmatpush.bf16.msrb.mxu0 %v3045_v53  ;;  %v1756_v20 = vadd.f32 %v1755_v52, %v458_v43  ;;  %v3743_v4 = vld [vmem:[#allocation7 + $0x2ac] sm:$0xf]  ;;  %v2601_v53 = vor.u32 %v3679_v63, %v2598_v39  ;;  %v2729_v14 = vor.u32 %v3711_v0, %v2726_v3  ;;  %v2694_v43 = vld [vmem:[#allocation7 + $0x178] sm:$0xf0] }
  0xdb   :  { %2025 = vmatpush.bf16.msrb.mxu1 %v3173_v16  ;;  %v1768_v62 = vpop.f32.mrf.mxu1  ;;  %v2857_v15 = vor.u32 %v3743_v4, %v2854_v45  ;;  %v3675_v16 = vld [vmem:[#allocation7 + $0x8c] sm:$0xf]  ;;  %v2550_v55 = vld [vmem:[#allocation7 + $0x58] sm:$0xf0] }
  0xdc   :  { %v1769_v2 = vadd.f32 %v1768_v62, %v1756_v20  ;;  %v3703_v34 = vld [vmem:[#allocation7 + $0x16c] sm:$0xf]  ;;  %v2678_v21 = vld [vmem:[#allocation7 + $0x158] sm:$0xf0] }
  0xdd   :  { %2038 = vmatpush.bf16.msrb.mxu2 %v3301_v17  ;;  %2051 = vmatpush.bf16.msrb.mxu3 %v3429_v23  ;;  %v1794_v13 = vpop.f32.mrf.mxu3  ;;  %v2582_v17 = vld [vmem:[#allocation7 + $0x98] sm:$0xf0]  ;;  %v3667_v54 = vld [vmem:[#allocation7 + $0x4c] sm:$0xf] }
  0xde   :  { %2013 = vmatpush.bf16.msrb.mxu0 %v3029_v38  ;;  %v2585_v38 = vor.u32 %v3675_v16, %v2582_v17  ;;  %v3699_v56 = vld [vmem:[#allocation7 + $0x14c] sm:$0xf]  ;;  %v2934_v62 = vld [vmem:[#allocation7 + $0x358] sm:$0xf0]  ;;  %v2553_v63 = vor.u32 %v3667_v54, %v2550_v55 }
  0xdf   :  { %2026 = vmatpush.bf16.msrb.mxu1 %v3157_v12  ;;  %v1781_v5 = vpop.f32.mrf.mxu2  ;;  %v3671_v12 = vld [vmem:[#allocation7 + $0x6c] sm:$0xf]  ;;  %v2681_v39 = vor.u32 %v3699_v56, %v2678_v21  ;;  %v2534_v3 = vld [vmem:[#allocation7 + $0x38] sm:$0xf0] }
  0xe0   :  { %v1782_v10 = vadd.f32 %v1781_v5, %v1769_v2  ;;  %v3731_v36 = vld [vmem:[#allocation7 + $0x24c] sm:$0xf]  ;;  %v2662_v5 = vld [vmem:[#allocation7 + $0x138] sm:$0xf0] }
  0xe1   :  { %2039 = vmatpush.bf16.msrb.mxu2 %v3285_v30  ;;  %2052 = vmatpush.bf16.msrb.mxu3 %v3413_v44  ;;  %v1757_v23 = vpop.f32.mrf.mxu0  ;;  %v2566_v30 = vld [vmem:[#allocation7 + $0x78] sm:$0xf0]  ;;  %v3735_v44 = vld [vmem:[#allocation7 + $0x26c] sm:$0xf] }
  0xe2   :  { %2058 = vmatpush.bf16.msra.mxu0 %v2633_v46  ;;  %2027 = vmatmul.bf16.vlgmr.msrb.gmra.mxu1 %v4389_v27  ;;  %v4413_v25 = vadd.f32 %v1794_v13, %v1782_v10  ;;  %v2822_v46 = vld [vmem:[#allocation7 + $0x278] sm:$0xf0]  ;;  %v2569_v19 = vor.u32 %v3671_v12, %v2566_v30  ;;  %v3663_v2 = vld [vmem:[#allocation7 + $0x2c] sm:$0xf] }
  0xe3   :  { %2071 = vmatpush.bf16.msra.mxu1 %v2761_v47  ;;  %2014 = vmatmul.bf16.vlgmr.msrb.gmra.mxu0 %v4384_v22  ;;  %v1770_v11 = vpop.f32.mrf.mxu1  ;;  %v2825_v52 = vor.u32 %v3735_v44, %v2822_v46  ;;  %v3695_v4 = vld [vmem:[#allocation7 + $0x12c] sm:$0xf]  ;;  %v2790_v8 = vld [vmem:[#allocation7 + $0x238] sm:$0xf0] }
  0xe4   :  { %2040 = vmatmul.bf16.vlgmr.msrb.gmra.mxu2 %v4382_v6  ;;  %2053 = vmatmul.bf16.vlgmr.msrb.gmra.mxu3 %v4386_v26  ;;  %v3727_v7 = vld [vmem:[#allocation7 + $0x22c] sm:$0xf]  ;;  %v2918_v13 = vld [vmem:[#allocation7 + $0x338] sm:$0xf0]  ;;  %v2665_v17 = vor.u32 %v3695_v4, %v2662_v5 }
  0xe5   :  { %2084 = vmatpush.bf16.msra.mxu2 %v2889_v48  ;;  %2097 = vmatpush.bf16.msra.mxu3 %v3017_v51  ;;  %v3767_v48 = vld [vmem:[#allocation7 + $0x36c] sm:$0xf]  ;;  %v1796_v35 = vpop.f32.mrf.mxu3  ;;  %v2697_v51 = vor.u32 %v3703_v34, %v2694_v43  ;;  %v2518_v16 = vld [vmem:[#allocation7 + $0x18] sm:$0xf0]  ;;  %v2793_v59 = vor.u32 %v3727_v7, %v2790_v8 }
  0xe6   :  { %2059 = vmatpush.bf16.msra.mxu0 %v2617_v58  ;;  %v2953_v20 = vor.u32 %v3767_v48, %v2950_v18  ;;  %v2806_v58 = vld [vmem:[#allocation7 + $0x258] sm:$0xf0]  ;;  %v3723_v28 = vld [vmem:[#allocation7 + $0x20c] sm:$0xf] }
  0xe7   :  { %2072 = vmatpush.bf16.msra.mxu1 %v2745_v60  ;;  %v1783_v47 = vpop.f32.mrf.mxu2  ;;  %v2809_v0 = vor.u32 %v3731_v36, %v2806_v58  ;;  %v2646_v23 = vld [vmem:[#allocation7 + $0x118] sm:$0xf0]  ;;  %v3755_v37 = vld [vmem:[#allocation7 + $0x30c] sm:$0xf] }
  0xe8   :  { %v2774_v33 = vld [vmem:[#allocation7 + $0x218] sm:$0xf0]  ;;  %v3847_v11 = vld [vmem:[#allocation7 + $0x5ec] sm:$0xf] }
  0xe9   :  { %2085 = vmatpush.bf16.msra.mxu2 %v2873_v61  ;;  %2098 = vmatpush.bf16.msra.mxu3 %v3001_v1  ;;  %v4415_v60 = vpop.f32.mrf.mxu0  ;;  %v3763_v61 = vld [vmem:[#allocation7 + $0x34c] sm:$0xf]  ;;  %v3270_v34 = vld [vmem:[#allocation7 + $0x5f8] sm:$0xf0]  ;;  %v2777_v46 = vor.u32 %v3723_v28, %v2774_v33 }
  0xea   :  { %2060 = vmatpush.bf16.msra.mxu0 %v2601_v53  ;;  %v2937_v45 = vor.u32 %v3763_v61, %v2934_v62  ;;  %v3759_v53 = vld [vmem:[#allocation7 + $0x32c] sm:$0xf]  ;;  %v3398_v43 = vld [vmem:[#allocation7 + $0x6f8] sm:$0xf0] }
  0xeb   :  { %2073 = vmatpush.bf16.msra.mxu1 %v2729_v14  ;;  %v4417_v1 = vpop.f32.mrf.mxu1  ;;  %v2537_v14 = vor.u32 %v3663_v2, %v2534_v3  ;;  %v2921_v31 = vor.u32 %v3759_v53, %v2918_v13  ;;  %v3911_v47 = vld [vmem:[#allocation7 + $0x7ec] sm:$0xf]  ;;  %v3526_v48 = vld [vmem:[#allocation7 + $0x7f8] sm:$0xf0] }
  0xec   :  { %v3811_v54 = vld [vmem:[#allocation7 + $0x4cc] sm:$0xf]  ;;  %v3126_v55 = vld [vmem:[#allocation7 + $0x4d8] sm:$0xf0]  ;;  %v3529_v21 = vor.u32 %v3911_v47, %v3526_v48 }
  0xed   :  { %2086 = vmatpush.bf16.msra.mxu2 %v2857_v15  ;;  %2099 = vmatpush.bf16.msra.mxu3 %v2985_v24  ;;  %v3659_v15 = vld [vmem:[#allocation7 + $0xc] sm:$0xf]  ;;  %v4421_v32 = vpop.f32.mrf.mxu3  ;;  %v3254_v36 = vld [vmem:[#allocation7 + $0x5d8] sm:$0xf0] }
  0xee   :  { %2061 = vmatpush.bf16.msra.mxu0 %v2585_v38  ;;  %v3691_v24 = vld [vmem:[#allocation7 + $0x10c] sm:$0xf]  ;;  %v2902_v38 = vld [vmem:[#allocation7 + $0x318] sm:$0xf0]  ;;  %v2521_v30 = vor.u32 %v3659_v15, %v2518_v16 }
  0xef   :  { %2074 = vmatpush.bf16.msra.mxu1 %v2713_v40  ;;  %v4419_v10 = vpop.f32.mrf.mxu2  ;;  %v3815_v40 = vld [vmem:[#allocation7 + $0x4ec] sm:$0xf]  ;;  %v2649_v44 = vor.u32 %v3691_v24, %v2646_v23  ;;  %v3382_v61 = vld [vmem:[#allocation7 + $0x6d8] sm:$0xf0] }
  0xf0   :  { %v3843_v56 = vld [vmem:[#allocation7 + $0x5cc] sm:$0xf]  ;;  %v3238_v8 = vld [vmem:[#allocation7 + $0x5b8] sm:$0xf0] }
  0xf1   :  { %2087 = vmatpush.bf16.msra.mxu2 %v2841_v41  ;;  %2100 = vmatpush.bf16.msra.mxu3 %v2969_v42  ;;  %v3142_v41 = vld [vmem:[#allocation7 + $0x4f8] sm:$0xf0]  ;;  %v1809_v12 = vpop.f32.mrf.mxu0  ;;  %v3879_v42 = vld [vmem:[#allocation7 + $0x6ec] sm:$0xf]  ;;  %v3257_v2 = vor.u32 %v3843_v56, %v3254_v36 }
  0xf2   :  { %2062 = vmatpush.bf16.msra.mxu0 %v2569_v19  ;;  %v2905_v19 = vor.u32 %v3755_v37, %v2902_v38  ;;  %v3145_v35 = vor.u32 %v3815_v40, %v3142_v41  ;;  %v3875_v58 = vld [vmem:[#allocation7 + $0x6cc] sm:$0xf]  ;;  %v3366_v13 = vld [vmem:[#allocation7 + $0x6b8] sm:$0xf0] }
  0xf3   :  { %2075 = vmatpush.bf16.msra.mxu1 %v2697_v51  ;;  %v1822_v18 = vpop.f32.mrf.mxu1  ;;  %v3273_v51 = vor.u32 %v3847_v11, %v3270_v34  ;;  %v3907_v62 = vld [vmem:[#allocation7 + $0x7cc] sm:$0xf]  ;;  %v3385_v3 = vor.u32 %v3875_v58, %v3382_v61  ;;  %v3494_v15 = vld [vmem:[#allocation7 + $0x7b8] sm:$0xf0] }
  0xf4   :  { %v3807_v4 = vld [vmem:[#allocation7 + $0x4ac] sm:$0xf]  ;;  %v3094_v23 = vld [vmem:[#allocation7 + $0x498] sm:$0xf0] }
  0xf5   :  { %2088 = vmatpush.bf16.msra.mxu2 %v2825_v52  ;;  %2101 = vmatpush.bf16.msra.mxu3 %v2953_v20  ;;  %v3401_v52 = vor.u32 %v3879_v42, %v3398_v43  ;;  %v3839_v5 = vld [vmem:[#allocation7 + $0x5ac] sm:$0xf]  ;;  %v3350_v37 = vld [vmem:[#allocation7 + $0x698] sm:$0xf0] }
  0xf6   :  { %2063 = vmatpush.bf16.msra.mxu0 %v2553_v63  ;;  %v3510_v63 = vld [vmem:[#allocation7 + $0x7d8] sm:$0xf0]  ;;  %v3871_v53 = vld [vmem:[#allocation7 + $0x6ac] sm:$0xf] }
  0xf7   :  { %2076 = vmatpush.bf16.msra.mxu1 %v2681_v39  ;;  %v1835_v20 = vpop.f32.mrf.mxu2  ;;  %v3129_v39 = vor.u32 %v3811_v54, %v3126_v55  ;;  %v3513_v7 = vor.u32 %v3907_v62, %v3510_v63  ;;  %v3803_v24 = vld [vmem:[#allocation7 + $0x48c] sm:$0xf]  ;;  %v3078_v12 = vld [vmem:[#allocation7 + $0x478] sm:$0xf0] }
  0xf8   :  { %v3867_v33 = vld [vmem:[#allocation7 + $0x68c] sm:$0xf]  ;;  %v3206_v43 = vld [vmem:[#allocation7 + $0x578] sm:$0xf0] }
  0xf9   :  { %2089 = vmatpush.bf16.msra.mxu2 %v2809_v0  ;;  %2102 = vmatpush.bf16.msra.mxu3 %v2937_v45  ;;  %v1848_v0 = vpop.f32.mrf.mxu3  ;;  %v3110_v45 = vld [vmem:[#allocation7 + $0x4b8] sm:$0xf0]  ;;  %v3899_v38 = vld [vmem:[#allocation7 + $0x78c] sm:$0xf]  ;;  %v3353_v41 = vor.u32 %v3867_v33, %v3350_v37 }
  0xfa   :  { %2064 = vmatpush.bf16.msra.mxu0 %v2537_v14  ;;  %v3903_v14 = vld [vmem:[#allocation7 + $0x7ac] sm:$0xf]  ;;  %v3113_v16 = vor.u32 %v3807_v4, %v3110_v45  ;;  %v3462_v48 = vld [vmem:[#allocation7 + $0x778] sm:$0xf0] }
  0xfb   :  { %2077 = vmatpush.bf16.msra.mxu1 %v2665_v17  ;;  %v3241_v17 = vor.u32 %v3839_v5, %v3238_v8  ;;  %v3497_v28 = vor.u32 %v3903_v14, %v3494_v15  ;;  %v3799_v11 = vld [vmem:[#allocation7 + $0x46c] sm:$0xf]  ;;  %v3190_v20 = vld [vmem:[#allocation7 + $0x558] sm:$0xf0] }
  0xfc   :  { %v3895_v47 = vld [vmem:[#allocation7 + $0x76c] sm:$0xf]  ;;  %v3081_v18 = vor.u32 %v3799_v11, %v3078_v12  ;;  %v3318_v36 = vld [vmem:[#allocation7 + $0x658] sm:$0xf0] }
  0xfd   :  { %2090 = vmatpush.bf16.msra.mxu2 %v2793_v59  ;;  %2103 = vmatpush.bf16.msra.mxu3 %v2921_v31  ;;  %v3369_v59 = vor.u32 %v3871_v53, %v3366_v13  ;;  %v3222_v31 = vld [vmem:[#allocation7 + $0x598] sm:$0xf0]  ;;  %v3827_v54 = vld [vmem:[#allocation7 + $0x54c] sm:$0xf]  ;;  %v3465_v56 = vor.u32 %v3895_v47, %v3462_v48  ;;  %v3920_v48 = vld [vmem:[#allocation10 + $0x30] sm:$0xff] }
  0xfe   :  { %2065 = vmatpush.bf16.msra.mxu0 %v2521_v30  ;;  %v3831_v30 = vld [vmem:[#allocation7 + $0x56c] sm:$0xf]  ;;  %v3446_v62 = vld [vmem:[#allocation7 + $0x758] sm:$0xf0]  ;;  %v3193_v0 = vor.u32 %v3827_v54, %v3190_v20 }
  0xff   :  { %2078 = vmatpush.bf16.msra.mxu1 %v2649_v44  ;;  %v4429_v34 = vpop.f32.mrf.mxu1  ;;  %v3863_v44 = vld [vmem:[#allocation7 + $0x66c] sm:$0xf]  ;;  %v3046_v4 = vld [vmem:[#allocation7 + $0x438] sm:$0xf0] }
 0x100   :  { %v4427_v40 = vpop.f32.mrf.mxu0  ;;  %v3891_v61 = vld [vmem:[#allocation7 + $0x74c] sm:$0xf]  ;;  %v3174_v8 = vld [vmem:[#allocation7 + $0x538] sm:$0xf0] }
 0x101   :  { %2091 = vmatpush.bf16.msra.mxu2 %v2777_v46  ;;  %2104 = vmatpush.bf16.msra.mxu3 %v2905_v19  ;;  %v3334_v46 = vld [vmem:[#allocation7 + $0x678] sm:$0xf0]  ;;  %v3209_v19 = vor.u32 %v3831_v30, %v3206_v43  ;;  %v3823_v45 = vld [vmem:[#allocation7 + $0x52c] sm:$0xf] }
 0x102   :  { %2110 = vmatpush.bf16.msrb.mxu0 %v3145_v35  ;;  %2079 = vmatmul.bf16.vlgmr.msra.gmra.mxu1 %v4355_v9  ;;  %v3337_v35 = vor.u32 %v3863_v44, %v3334_v46  ;;  %v3855_v53 = vld [vmem:[#allocation7 + $0x62c] sm:$0xf]  ;;  %v3302_v13 = vld [vmem:[#allocation7 + $0x638] sm:$0xf0] }
 0x103   :  { %2123 = vmatpush.bf16.msrb.mxu1 %v3273_v51  ;;  %2066 = vmatmul.bf16.vlgmr.msra.gmra.mxu0 %v4316_v50  ;;  %v3478_v50 = vld [vmem:[#allocation7 + $0x798] sm:$0xf0]  ;;  %v3795_v51 = vld [vmem:[#allocation7 + $0x44c] sm:$0xf] }
 0x104   :  { %2092 = vmatmul.bf16.vlgmr.msra.gmra.mxu2 %v4314_v49  ;;  %2105 = vmatmul.bf16.vlgmr.msra.gmra.mxu3 %v4326_v57  ;;  %v3835_v49 = vld [vmem:[#allocation7 + $0x58c] sm:$0xf]  ;;  %v3097_v57 = vor.u32 %v3803_v24, %v3094_v23  ;;  %v3481_v42 = vor.u32 %v3899_v38, %v3478_v50  ;;  %v3430_v15 = vld [vmem:[#allocation7 + $0x738] sm:$0xf0]  ;;  %v3305_v24 = vor.u32 %v3855_v53, %v3302_v13 }
 0x105   :  { %2136 = vmatpush.bf16.msrb.mxu2 %v3401_v52  ;;  %2149 = vmatpush.bf16.msrb.mxu3 %v3529_v21  ;;  %v3225_v9 = vor.u32 %v3835_v49, %v3222_v31  ;;  %v3062_v52 = vld [vmem:[#allocation7 + $0x458] sm:$0xf0]  ;;  %v3859_v21 = vld [vmem:[#allocation7 + $0x64c] sm:$0xf] }
 0x106   :  { %2111 = vmatpush.bf16.msrb.mxu0 %v3129_v39  ;;  %v3065_v63 = vor.u32 %v3795_v51, %v3062_v52  ;;  %v3887_v14 = vld [vmem:[#allocation7 + $0x72c] sm:$0xf]  ;;  %v3030_v49 = vld [vmem:[#allocation7 + $0x418] sm:$0xf0]  ;;  %v3918_v52 = vld [vmem:[#allocation10 + $0x20] sm:$0xff] }
 0x107   :  { %2124 = vmatpush.bf16.msrb.mxu1 %v3257_v2  ;;  %v4431_v55 = vpop.f32.mrf.mxu2  ;;  %v4433_v58 = vpop.f32.mrf.mxu3  ;;  %v3321_v2 = vor.u32 %v3859_v21, %v3318_v36  ;;  %v3787_v23 = vld [vmem:[#allocation7 + $0x40c] sm:$0xf]  ;;  %v3433_v33 = vor.u32 %v3887_v14, %v3430_v15  ;;  %v3158_v37 = vld [vmem:[#allocation7 + $0x518] sm:$0xf0]  ;;  %v3914_v14 = vld [vmem:[#allocation10] sm:$0xff] }
 0x108   :  { %v1861_v39 = vpop.f32.mrf.mxu0  ;;  %v1874_v5 = vpop.f32.mrf.mxu1  ;;  %v3851_v38 = vld [vmem:[#allocation7 + $0x60c] sm:$0xf]  ;;  %v3286_v50 = vld [vmem:[#allocation7 + $0x618] sm:$0xf0]  ;;  %v3033_v12 = vor.u32 %v3787_v23, %v3030_v49 }
 0x109   :  { %2137 = vmatpush.bf16.msrb.mxu2 %v3385_v3  ;;  %2150 = vmatpush.bf16.msrb.mxu3 %v3513_v7  ;;  %v3791_v3 = vld [vmem:[#allocation7 + $0x42c] sm:$0xf]  ;;  %v3449_v7 = vor.u32 %v3891_v61, %v3446_v62  ;;  %v3921_v44 = vld [vmem:[#allocation10 + $0x38] sm:$0xff] }
 0x10a   :  { %2112 = vmatpush.bf16.msrb.mxu0 %v3113_v16  ;;  %v459_v16 = vperm.slane %v4406_v29, 1  ;;  %v3929_v46 = vld [vmem:[#allocation10 + $0x78] sm:$0xff]  ;;  %v3927_v51 = vld [vmem:[#allocation10 + $0x68] sm:$0xff] }
 0x10b   :  { %2125 = vmatpush.bf16.msrb.mxu1 %v3241_v17  ;;  %v3049_v17 = vor.u32 %v3791_v3, %v3046_v4  ;;  %v3925_v36 = vld [vmem:[#allocation10 + $0x58] sm:$0xff]  ;;  %v3935_v62 = vld [vmem:[#allocation10 + $0xa8] sm:$0xff] }
 0x10c   :  { %v1860_v11 = vadd.f32 %v4427_v40, %v459_v16  ;;  %v3928_v40 = vld [vmem:[#allocation10 + $0x70] sm:$0xff] }
 0x10d   :  { %2138 = vmatpush.bf16.msrb.mxu2 %v3369_v59  ;;  %2151 = vmatpush.bf16.msrb.mxu3 %v3497_v28  ;;  %v3177_v59 = vor.u32 %v3823_v45, %v3174_v8  ;;  %v3819_v28 = vld [vmem:[#allocation7 + $0x50c] sm:$0xf] }
 0x10e   :  { %2113 = vmatpush.bf16.msrb.mxu0 %v3097_v57  ;;  %v3161_v30 = vor.u32 %v3819_v28, %v3158_v37  ;;  %v1873_v47 = vadd.f32 %v4429_v34, %v1860_v11  ;;  %v3919_v34 = vld [vmem:[#allocation10 + $0x28] sm:$0xff]  ;;  %v3930_v37 = vld [vmem:[#allocation10 + $0x80] sm:$0xff] }
 0x10f   :  { %2126 = vmatpush.bf16.msrb.mxu1 %v3225_v9  ;;  %v1887_v31 = vpop.f32.mrf.mxu2  ;;  %v1900_v57 = vpop.f32.mrf.mxu3  ;;  %v3883_v9 = vld [vmem:[#allocation7 + $0x70c] sm:$0xf] }
 0x110   :  { %v3915_v45 = vld [vmem:[#allocation10 + $0x8] sm:$0xff] }
 0x111   :  { %2139 = vmatpush.bf16.msrb.mxu2 %v3353_v41  ;;  %2152 = vmatpush.bf16.msrb.mxu3 %v3481_v42  ;;  %v3414_v41 = vld [vmem:[#allocation7 + $0x718] sm:$0xf0]  ;;  %v3289_v42 = vor.u32 %v3851_v38, %v3286_v50  ;;  %v3931_v28 = vld [vmem:[#allocation10 + $0x88] sm:$0xff]  ;;  %v460_v38 = vperm.slane %v4406_v29, 2 }
 0x112   :  { %2114 = vmatpush.bf16.msrb.mxu0 %v3081_v18  ;;  %v3417_v43 = vor.u32 %v3883_v9, %v3414_v41  ;;  %v3937_v18 = vld [vmem:[#allocation10 + $0xb8] sm:$0xff] }
 0x113   :  { %2127 = vmatpush.bf16.msrb.mxu1 %v3209_v19  ;;  %v1886_v19 = vadd.f32 %v4431_v55, %v1873_v47  ;;  %v3926_v55 = vld [vmem:[#allocation10 + $0x60] sm:$0xff] }
 0x115   :  { %2140 = vmatpush.bf16.msrb.mxu2 %v3337_v35  ;;  %2153 = vmatpush.bf16.msrb.mxu3 %v3465_v56  ;;  %v1899_v35 = vadd.f32 %v4433_v58, %v1886_v19 }
 0x116   :  { %2115 = vmatpush.bf16.msrb.mxu0 %v3065_v63  ;;  %v3916_v63 = vld [vmem:[#allocation10 + $0x10] sm:$0xff] }
 0x117   :  { %2128 = vmatpush.bf16.msrb.mxu1 %v3193_v0 }
 0x119   :  { %2141 = vmatpush.bf16.msrb.mxu2 %v3321_v2  ;;  %2154 = vmatpush.bf16.msrb.mxu3 %v3449_v7  ;;  %v3924_v2 = vld [vmem:[#allocation10 + $0x50] sm:$0xff]  ;;  %v3923_v7 = vld [vmem:[#allocation10 + $0x48] sm:$0xff] }
 0x11a   :  { %2116 = vmatpush.bf16.msrb.mxu0 %v3049_v17 }
 0x11b   :  { %2129 = vmatpush.bf16.msrb.mxu1 %v3177_v59 }
 0x11d   :  { %2142 = vmatpush.bf16.msrb.mxu2 %v3305_v24  ;;  %2155 = vmatpush.bf16.msrb.mxu3 %v3433_v33 }
 0x11e   :  { %2117 = vmatpush.bf16.msrb.mxu0 %v3033_v12 }
 0x11f   :  { %2130 = vmatpush.bf16.msrb.mxu1 %v3161_v30  ;;  %v1924_v56 = vpop.f32.mrf.mxu1 }
 0x120   :  { %v1911_v54 = vpop.f32.mrf.mxu0 }
 0x121   :  { %2143 = vmatpush.bf16.msrb.mxu2 %v3289_v42  ;;  %2156 = vmatpush.bf16.msrb.mxu3 %v3417_v43 }
 0x122   :  { %2430 = vmatpush.bf16.msra.mxu0 %v3921_v44  ;;  %2131 = vmatmul.bf16.vlgmr.msrb.gmra.mxu1 %v4389_v27  ;;  %v1912_v27 = vadd.f32 %v1911_v54, %v1899_v35  ;;  %v3943_v54 = vld [vmem:[#allocation10 + $0xe8] sm:$0xff] }
 0x123   :  { %2443 = vmatpush.bf16.msra.mxu1 %v3929_v46  ;;  %2118 = vmatmul.bf16.vlgmr.msrb.gmra.mxu0 %v4384_v22  ;;  %v1808_v22 = vadd.f32 %v4415_v60, %v4413_v25  ;;  %v3934_v60 = vld [vmem:[#allocation10 + $0xa0] sm:$0xff] }
 0x124   :  { %2144 = vmatmul.bf16.vlgmr.msrb.gmra.mxu2 %v4382_v6  ;;  %2157 = vmatmul.bf16.vlgmr.msrb.gmra.mxu3 %v4386_v26  ;;  %v3936_v6 = vld [vmem:[#allocation10 + $0xb0] sm:$0xff]  ;;  %v3917_v26 = vld [vmem:[#allocation10 + $0x18] sm:$0xff]  ;;  %v1925_v20 = vadd.f32 %v1924_v56, %v1912_v27  ;;  %v3942_v27 = vld [vmem:[#allocation10 + $0xe0] sm:$0xff] }
 0x125   :  { %2456 = vmatpush.bf16.msra.mxu2 %v3937_v18  ;;  %v1821_v21 = vadd.f32 %v4417_v1, %v1808_v22  ;;  %v3933_v1 = vld [vmem:[#allocation10 + $0x98] sm:$0xff] }
 0x126   :  { %2431 = vmatpush.bf16.msra.mxu0 %v3920_v48  ;;  %v3945_v18 = vld [vmem:[#allocation10 + $0xf8] sm:$0xff] }
 0x127   :  { %2444 = vmatpush.bf16.msra.mxu1 %v3928_v40  ;;  %v1937_v58 = vpop.f32.mrf.mxu2  ;;  %v1950_v61 = vpop.f32.mrf.mxu3  ;;  %v1834_v0 = vadd.f32 %v4419_v10, %v1821_v21  ;;  %v3922_v10 = vld [vmem:[#allocation10 + $0x40] sm:$0xff]  ;;  %2469 = vmatpush.bf16.msra.mxu3 %v3945_v18  ;;  %v3941_v56 = vld [vmem:[#allocation10 + $0xd8] sm:$0xff]  ;;  %v3939_v21 = vld [vmem:[#allocation10 + $0xc8] sm:$0xff] }
 0x128   :  { %v1938_v39 = vadd.f32 %v1937_v58, %v1925_v20  ;;  %v1913_v25 = vpop.f32.mrf.mxu0  ;;  %v1926_v3 = vpop.f32.mrf.mxu1 }
 0x129   :  { %2457 = vmatpush.bf16.msra.mxu2 %v3936_v6  ;;  %v1847_v5 = vadd.f32 %v4421_v32, %v1834_v0  ;;  %v3932_v32 = vld [vmem:[#allocation10 + $0x90] sm:$0xff] }
 0x12a   :  { %2432 = vmatpush.bf16.msra.mxu0 %v3919_v34  ;;  %v1951_v4 = vadd.f32 %v1950_v61, %v1938_v39  ;;  %v3944_v34 = vld [vmem:[#allocation10 + $0xf0] sm:$0xff]  ;;  %v461_v39 = vperm.slane %v4406_v29, 3 }
 0x12b   :  { %2445 = vmatpush.bf16.msra.mxu1 %v3927_v51  ;;  %v2162_v15 = vmax.f32 %v1847_v5, 0.0  ;;  %2470 = vmatpush.bf16.msra.mxu3 %v3944_v34  ;;  %v3940_v6 = vld [vmem:[#allocation10 + $0xd0] sm:$0xff] }
 0x12c   :  { %v2163_v13 = vmax.f32 %v1951_v4, 0.0 }
 0x12d   :  { %2458 = vmatpush.bf16.msra.mxu2 %v3935_v62  ;;  %v2166_v17 = vpack.c.bf16 %v2162_v15, %v2162_v15  ;;  %v3938_v62 = vld [vmem:[#allocation10 + $0xc0] sm:$0xff] }
 0x12e   :  { %2433 = vmatpush.bf16.msra.mxu0 %v3918_v52  ;;  %v2167_v16 = vpack.c.bf16 %v2163_v13, %v2163_v13 }
 0x12f   :  { %2446 = vmatpush.bf16.msra.mxu1 %v3926_v55  ;;  %v1939_v8 = vpop.f32.mrf.mxu2  ;;  %v1952_v53 = vpop.f32.mrf.mxu3  ;;  %2471 = vmatpush.bf16.msra.mxu3 %v3943_v54 }
 0x131   :  { %2459 = vmatpush.bf16.msra.mxu2 %v3934_v60 }
 0x132   :  { %2434 = vmatpush.bf16.msra.mxu0 %v3917_v26 }
 0x133   :  { %2447 = vmatpush.bf16.msra.mxu1 %v3925_v36  ;;  %2472 = vmatpush.bf16.msra.mxu3 %v3942_v27 }
 0x135   :  { %2460 = vmatpush.bf16.msra.mxu2 %v3933_v1 }
 0x136   :  { %2435 = vmatpush.bf16.msra.mxu0 %v3916_v63 }
 0x137   :  { %2448 = vmatpush.bf16.msra.mxu1 %v3924_v2  ;;  %2473 = vmatpush.bf16.msra.mxu3 %v3941_v56 }
 0x139   :  { %2461 = vmatpush.bf16.msra.mxu2 %v3932_v32 }
 0x13a   :  { %2436 = vmatpush.bf16.msra.mxu0 %v3915_v45 }
 0x13b   :  { %2449 = vmatpush.bf16.msra.mxu1 %v3923_v7  ;;  %2474 = vmatpush.bf16.msra.mxu3 %v3940_v6 }
 0x13d   :  { %2462 = vmatpush.bf16.msra.mxu2 %v3931_v28 }
 0x13e   :  { %2437 = vmatpush.bf16.msra.mxu0 %v3914_v14 }
 0x13f   :  { %2450 = vmatpush.bf16.msra.mxu1 %v3922_v10  ;;  %v1976_v24 = vpop.f32.mrf.mxu1  ;;  %2475 = vmatpush.bf16.msra.mxu3 %v3939_v21 }
 0x140   :  { %v1963_v59 = vpop.f32.mrf.mxu0 }
 0x141   :  { %2438 = vmatmul.bf16.vlgmr.msra.gmra.mxu0 %v2166_v17  ;;  %2463 = vmatpush.bf16.msra.mxu2 %v3930_v37  ;;  %v1964_v9 = vadd.f32 %v1963_v59, %v460_v38 }
 0x142   :  { %2451 = vmatmul.bf16.vlgmr.msra.gmra.mxu1 %v2167_v16 }
 0x143   :  { %v1977_v41 = vadd.f32 %v1976_v24, %v1964_v9  ;;  %2476 = vmatpush.bf16.msra.mxu3 %v3938_v62  ;;  %v3956_v24 = vld [vmem:[%s4462_s5] ss:$0 sm:$0xff] }
 0x147   :  { %v1989_v23 = vpop.f32.mrf.mxu2  ;;  %v2002_v49 = vpop.f32.mrf.mxu3 }
 0x148   :  { %v1965_v31 = vpop.f32.mrf.mxu0  ;;  %v1978_v33 = vpop.f32.mrf.mxu1  ;;  %v1990_v11 = vadd.f32 %v1989_v23, %v1977_v41 }
 0x14a   :  { %v2003_v12 = vadd.f32 %v2002_v49, %v1990_v11 }
 0x14f   :  { %v1991_v50 = vpop.f32.mrf.mxu2  ;;  %v2004_v57 = vpop.f32.mrf.mxu3 }
 0x15f   :  { %v2028_v43 = vpop.f32.mrf.mxu1 }
 0x160   :  { %v2015_v30 = vpop.f32.mrf.mxu0 }
 0x161   :  { %v2016_v42 = vadd.f32 %v2015_v30, %v2003_v12 }
 0x163   :  { %v2029_v44 = vadd.f32 %v2028_v43, %v2016_v42 }
 0x167   :  { %v2041_v46 = vpop.f32.mrf.mxu2  ;;  %v2054_v48 = vpop.f32.mrf.mxu3 }
 0x168   :  { %v2042_v47 = vadd.f32 %v2041_v46, %v2029_v44  ;;  %v2017_v19 = vpop.f32.mrf.mxu0  ;;  %v2030_v35 = vpop.f32.mrf.mxu1 }
 0x16a   :  { %v2055_v40 = vadd.f32 %v2054_v48, %v2042_v47 }
 0x16c   :  { %v2164_v51 = vmax.f32 %v2055_v40, 0.0 }
 0x16e   :  { %v2168_v52 = vpack.c.bf16 %v2164_v51, %v2164_v51 }
 0x16f   :  { %v2043_v22 = vpop.f32.mrf.mxu2  ;;  %v2056_v55 = vpop.f32.mrf.mxu3 }
 0x170   :  { %2464 = vmatmul.bf16.vlgmr.msra.gmra.mxu2 %v2168_v52 }
 0x17f   :  { %v2080_v20 = vpop.f32.mrf.mxu1 }
 0x180   :  { %v2067_v26 = vpop.f32.mrf.mxu0 }
 0x181   :  { %v2068_v0 = vadd.f32 %v2067_v26, %v461_v39 }
 0x183   :  { %v2081_v2 = vadd.f32 %v2080_v20, %v2068_v0 }
 0x187   :  { %v2093_v36 = vpop.f32.mrf.mxu2  ;;  %v2106_v58 = vpop.f32.mrf.mxu3 }
 0x188   :  { %v2069_v61 = vpop.f32.mrf.mxu0  ;;  %v2082_v63 = vpop.f32.mrf.mxu1  ;;  %v2094_v3 = vadd.f32 %v2093_v36, %v2081_v2 }
 0x18a   :  { %v2107_v4 = vadd.f32 %v2106_v58, %v2094_v3 }
 0x18f   :  { %v2095_v25 = vpop.f32.mrf.mxu2  ;;  %v2108_v60 = vpop.f32.mrf.mxu3 }
 0x19f   :  { %v2132_v1 = vpop.f32.mrf.mxu1 }
 0x1a0   :  { %v2119_v45 = vpop.f32.mrf.mxu0 }
 0x1a1   :  { %v2120_v5 = vadd.f32 %v2119_v45, %v2107_v4 }
 0x1a3   :  { %v2133_v7 = vadd.f32 %v2132_v1, %v2120_v5 }
 0x1a7   :  { %v2145_v8 = vpop.f32.mrf.mxu2  ;;  %v2158_v13 = vpop.f32.mrf.mxu3 }
 0x1a8   :  { %v2146_v53 = vadd.f32 %v2145_v8, %v2133_v7  ;;  %v2121_v14 = vpop.f32.mrf.mxu0  ;;  %v2134_v15 = vpop.f32.mrf.mxu1 }
 0x1aa   :  { %v2159_v10 = vadd.f32 %v2158_v13, %v2146_v53 }
 0x1ac   :  { %v2165_v16 = vmax.f32 %v2159_v10, 0.0 }
 0x1ae   :  { %v2169_v17 = vpack.c.bf16 %v2165_v16, %v2165_v16 }
 0x1af   :  { %v2147_v59 = vpop.f32.mrf.mxu2  ;;  %v2160_v29 = vpop.f32.mrf.mxu3 }
 0x1b0   :  { %2477 = vmatmul.bf16.vlgmr.msra.gmra.mxu3 %v2169_v17 }
 0x1be   :  { %v2439_v32 = vpop.f32.mrf.mxu0 }
 0x1bf   :  { %v2440_v23 = vadd.f32 %v3956_v24, %v2439_v32  ;;  %v2452_v49 = vpop.f32.mrf.mxu1 }
 0x1c1   :  { %v2453_v28 = vadd.f32 %v2452_v49, %v2440_v23 }
 0x1c6   :  { %v2441_v31 = vpop.f32.mrf.mxu0 }
 0x1c7   :  { %v2454_v33 = vpop.f32.mrf.mxu1 }
 0x1f3   :  { %v2465_v37 = vpop.f32.mrf.mxu2 }
 0x1f4   :  { %v2466_v50 = vadd.f32 %v2465_v37, %v2453_v28 }
 0x1fb   :  { %v2467_v38 = vpop.f32.mrf.mxu2 }
 0x233   :  { %v2478_v57 = vpop.f32.mrf.mxu3 }
 0x234   :  { %v2479_v9 = vadd.f32 %v2478_v57, %v2466_v50 }
 0x236   :  { %2482 = vst [vmem:[#allocation12] sm:$0xff] %v2479_v9 }
 0x237   :  { %2493 = dma.vmem_to_hbm [thread:$0]  %s2489_s27, 128, %s2491_s30, [#allocation4]  }
 0x23b   :  { %v2480_v41 = vpop.f32.mrf.mxu3 }
 0x23c   :  { %4097 = dma.done.wait [#allocation4], 128  }
 0x23d   :  { %4098 = vsyncadd [#allocation4], 4294967168 }
 0x23e   :  { %2498 = vsyncpa [#allocation3], 1 }
 0x23f   :  { %2499 = vsyncpa [#allocation8], 1 }
 0x240   :  { %2500 = vsyncpa [#allocation11], 1 }
 0x241   :  { %2501 = vsyncpa [#allocation4], 1 }
 0x242   :  { %2502 = vsyncpa [#allocation5], 1 }

</bundles_post_ra>
